<compile_context>
chip_gen: v5e
topology: v5e:2x2
jax: 0.10.0
libtpu: 0.0.40
codegen_flags: <defaults>
</compile_context>

<pallas_src>
import jax
import jax.numpy as jnp
from jax.experimental import pallas as pl
from jax.experimental.pallas import tpu as pltpu


def _hvgru_kernel(x_ref, wih0_ref, whh0_ref, w1cat_ref,
                  gi0b_ref, g0hb_ref, g1b_ref,
                  w1h_ref, b1h_ref, w2h_ref, b2h_ref,
                  out_ref):
    f32 = jnp.float32
    Bp = out_ref.shape[0]            # sublane-padded batch (multiple of 8)
    H = whh0_ref.shape[0]
    T = x_ref.shape[0] // Bp

    # ---- hoisted layer-0 input projection: ONE MXU pass over all T steps ----
    # gi0 columns: [r | z | n], biases (b_ir+b_hr, b_iz+b_hz, b_in) pre-folded.
    gi0 = jnp.dot(x_ref[...], wih0_ref[...], preferred_element_type=f32) + gi0b_ref[...]

    # Weights / biases loaded once and reused across the unrolled recurrence.
    whh0 = whh0_ref[...]             # (H, 3H)
    w1cat = w1cat_ref[...]           # (2H, 4H): [r | z | i_n | h_n], K = [h1; h2]
    g0hb = g0hb_ref[...]             # (1, 3H): [0, 0, b_hn] (layer 0)
    g1b = g1b_ref[...]               # (1, 4H): [b_ir+b_hr, b_iz+b_hz, b_in, b_hn]

    h1 = jnp.zeros((Bp, H), f32)
    h2 = jnp.zeros((Bp, H), f32)

    # Fully unrolled T-step recurrence; gate order follows PyTorch nn.GRU [r, z, n].
    # Exactly 2 MXU dots per step on the serial h-dependency chain.
    for t in range(T):
        # ---- layer 0 GRU cell: ONE (Bp,H)@(H,3H) dot ----
        gi = gi0[t * Bp:(t + 1) * Bp]                      # aligned 8-row sublane slice
        gh = jnp.dot(h1, whh0, preferred_element_type=f32) + g0hb
        r = jax.nn.sigmoid(gi[:, :H] + gh[:, :H])
        z = jax.nn.sigmoid(gi[:, H:2 * H] + gh[:, H:2 * H])
        n = jnp.tanh(gi[:, 2 * H:] + r * gh[:, 2 * H:])
        h1 = (1.0 - z) * n + z * h1

        # ---- layer 1 GRU cell: ONE (Bp,2H)@(2H,4H) dot ----
        # (inter-layer dropout is identity at inference)
        g = jnp.dot(jnp.concatenate([h1, h2], axis=1), w1cat,
                    preferred_element_type=f32) + g1b
        r = jax.nn.sigmoid(g[:, :H])
        z = jax.nn.sigmoid(g[:, H:2 * H])
        n = jnp.tanh(g[:, 2 * H:3 * H] + r * g[:, 3 * H:])
        h2 = (1.0 - z) * n + z * h2

    # ---- head on the last hidden state ----
    # LayerNorm (gamma/beta folded into w1h/b1h) -> Linear -> ReLU -> VPU reduce.
    mean = jnp.mean(h2, axis=-1, keepdims=True)
    var = jnp.mean((h2 - mean) ** 2, axis=-1, keepdims=True)   # biased var (PyTorch LN)
    hn = (h2 - mean) * jax.lax.rsqrt(var + 1e-5)
    y = jnp.dot(hn, w1h_ref[...], preferred_element_type=f32) + b1h_ref[...]
    y = jnp.maximum(y, 0.0)
    # Final (H//2, 1) projection as a cross-lane reduction instead of an N=1 MXU dot.
    out_ref[...] = jnp.sum(y * w2h_ref[...], axis=-1, keepdims=True) + b2h_ref[...]


def _pack_params(params):
    """Fold PyTorch-layout GRU/head params into the kernel's fused layout."""
    H = params["whh0"].shape[0]
    Hh = params["w1"].shape[1]

    def split(b):
        return b[:, 0:H], b[:, H:2 * H], b[:, 2 * H:3 * H]

    bih0_r, bih0_z, bih0_n = split(params["bih0"])
    bhh0_r, bhh0_z, bhh0_n = split(params["bhh0"])
    bih1_r, bih1_z, bih1_n = split(params["bih1"])
    bhh1_r, bhh1_z, bhh1_n = split(params["bhh1"])

    wih1, whh1 = params["wih1"], params["whh1"]
    zHH = jnp.zeros((H, H), jnp.float32)
    # Stacked layer-1 weight, K = [h1; h2], columns = [r | z | i_n | h_n] (2H, 4H).
    w1cat = jnp.concatenate([
        jnp.concatenate([wih1[:, 0:H], wih1[:, H:2 * H], wih1[:, 2 * H:], zHH], axis=1),
        jnp.concatenate([whh1[:, 0:H], whh1[:, H:2 * H], zHH, whh1[:, 2 * H:]], axis=1),
    ], axis=0)

    zrow = jnp.zeros_like(bih0_r)

    # Fold LayerNorm gamma/beta into the first head Linear.
    ln_g, ln_b = params["ln_g"], params["ln_b"]          # (1, H)
    w1h = params["w1"] * ln_g.reshape(H, 1)              # (H, H//2)
    b1h = params["b1"] + ln_b @ params["w1"]             # (1, H//2)

    return dict(
        wih0=params["wih0"],                              # (F, 3H)
        whh0=params["whh0"],                              # (H, 3H)
        w1cat=w1cat,                                      # (2H, 4H)
        gi0_b=jnp.concatenate([bih0_r + bhh0_r, bih0_z + bhh0_z, bih0_n], axis=1),
        g0h_b=jnp.concatenate([zrow, zrow, bhh0_n], axis=1),
        g1_b=jnp.concatenate([bih1_r + bhh1_r, bih1_z + bhh1_z, bih1_n, bhh1_n], axis=1),
        w1h=w1h, b1h=b1h,
        w2h=params["w2"].reshape(1, Hh),                  # (1, H//2) row for VPU reduce
        b2h=params["b2"],                                 # (1, 1)
    )


def hvgru_forward(x, params):
    """x: (B, T, F) float32 (batch_first, like the PyTorch module). Returns (B,)."""
    B, T, F = x.shape
    Bp = max(8, ((B + 7) // 8) * 8)   # pad batch to a sublane multiple
    p = _pack_params(params)

    # Time-major flattening with the batch padded to Bp rows so step t occupies
    # the aligned sublane tile rows [t*Bp, (t+1)*Bp).  Padded rows carry zeros;
    # they evolve independently and are sliced off after the call.
    xt = jnp.transpose(x, (1, 0, 2)).astype(jnp.float32)         # (T, B, F)
    xt = jnp.pad(xt, ((0, 0), (0, Bp - B), (0, 0)))              # (T, Bp, F)
    x_flat = xt.reshape(T * Bp, F)

    args = (x_flat, p["wih0"], p["whh0"], p["w1cat"],
            p["gi0_b"], p["g0h_b"], p["g1_b"],
            p["w1h"], p["b1h"], p["w2h"], p["b2h"])

    vmem = pl.BlockSpec(memory_space=pltpu.MemorySpace.VMEM)
    out = pl.pallas_call(
        _hvgru_kernel,
        out_shape=jax.ShapeDtypeStruct((Bp, 1), jnp.float32),
        in_specs=[vmem] * len(args),
        out_specs=vmem,
    )(*args)
    return out[:B, 0]


def make_params(key, n_feat, hidden):
    """Deterministic synthetic parameters with PyTorch-like shapes (stored transposed)."""
    H = hidden
    scale = 1.0 / jnp.sqrt(jnp.float32(H))
    ks = jax.random.split(key, 12)

    def u(k, shape):
        return jax.random.uniform(k, shape, jnp.float32, -scale, scale)

    return {
        # GRU layer 0: weight_ih_l0 (3H, F) -> stored (F, 3H); weight_hh_l0 (3H, H) -> (H, 3H)
        "wih0": u(ks[0], (n_feat, 3 * H)),
        "whh0": u(ks[1], (H, 3 * H)),
        "bih0": u(ks[2], (1, 3 * H)),
        "bhh0": u(ks[3], (1, 3 * H)),
        # GRU layer 1
        "wih1": u(ks[4], (H, 3 * H)),
        "whh1": u(ks[5], (H, 3 * H)),
        "bih1": u(ks[6], (1, 3 * H)),
        "bhh1": u(ks[7], (1, 3 * H)),
        # head: LayerNorm(H), Linear(H, H//2), Linear(H//2, 1)
        "ln_g": jnp.ones((1, H), jnp.float32),
        "ln_b": jnp.zeros((1, H), jnp.float32),
        "w1": u(ks[8], (H, H // 2)),
        "b1": u(ks[9], (1, H // 2)),
        "w2": u(ks[10], (H // 2, 1)),
        "b2": u(ks[11], (1, 1)),
    }


def hvgru_reference(x, params):
    """Pure-JAX reference (lax.scan GRU) mirroring PyTorch nn.GRU + head semantics."""
    B, T, F = x.shape
    H = params["whh0"].shape[0]

    def cell(x_t, h, wih, whh, bih, bhh):
        gi = x_t @ wih + bih
        gh = h @ whh + bhh
        i_r, i_z, i_n = gi[:, :H], gi[:, H:2 * H], gi[:, 2 * H:]
        h_r, h_z, h_n = gh[:, :H], gh[:, H:2 * H], gh[:, 2 * H:]
        r = jax.nn.sigmoid(i_r + h_r)
        z = jax.nn.sigmoid(i_z + h_z)
        n = jnp.tanh(i_n + r * h_n)
        return (1.0 - z) * n + z * h

    def step(carry, x_t):
        h1, h2 = carry
        h1 = cell(x_t, h1, params["wih0"], params["whh0"], params["bih0"], params["bhh0"])
        h2 = cell(h1, h2, params["wih1"], params["whh1"], params["bih1"], params["bhh1"])
        return (h1, h2), None

    init = (jnp.zeros((B, H), jnp.float32), jnp.zeros((B, H), jnp.float32))
    (_, h2), _ = jax.lax.scan(step, init, jnp.transpose(x, (1, 0, 2)))

    mean = jnp.mean(h2, axis=-1, keepdims=True)
    var = jnp.mean((h2 - mean) ** 2, axis=-1, keepdims=True)
    hn = (h2 - mean) * jax.lax.rsqrt(var + 1e-5)
    hn = hn * params["ln_g"] + params["ln_b"]
    y = jnp.maximum(hn @ params["w1"] + params["b1"], 0.0)
    y = y @ params["w2"] + params["b2"]
    return y[:, 0]


if __name__ == "__main__":
    B, T, F, H = 2, 8, 4, 32  # batch, seq len, n_feat, cfg['hidden']

    key = jax.random.PRNGKey(0)
    kx, kp = jax.random.split(key)
    x = jax.random.normal(kx, (B, T, F), jnp.float32)
    params = make_params(kp, F, H)

    out = hvgru_forward(x, params)
    out = jax.block_until_ready(out)

    ref = hvgru_reference(x, params)
    assert out.shape == (B,)
    assert jnp.allclose(out, ref, atol=1e-5, rtol=1e-5), (out, ref)

    print("KERNEL_OK")
</pallas_src>

<mosaic_0001>
module attributes {stable_mosaic.version = 11 : i64} {
  func.func @_hvgru_kernel(%arg0: memref<64x4xf32, #tpu.memory_space<vmem>>, %arg1: memref<4x96xf32, #tpu.memory_space<vmem>>, %arg2: memref<32x96xf32, #tpu.memory_space<vmem>>, %arg3: memref<64x128xf32, #tpu.memory_space<vmem>>, %arg4: memref<1x96xf32, #tpu.memory_space<vmem>>, %arg5: memref<1x96xf32, #tpu.memory_space<vmem>>, %arg6: memref<1x128xf32, #tpu.memory_space<vmem>>, %arg7: memref<32x16xf32, #tpu.memory_space<vmem>>, %arg8: memref<1x16xf32, #tpu.memory_space<vmem>>, %arg9: memref<1x16xf32, #tpu.memory_space<vmem>>, %arg10: memref<1x1xf32, #tpu.memory_space<vmem>>, %arg11: memref<8x1xf32, #tpu.memory_space<vmem>>) attributes {dimension_semantics = [], scalar_prefetch = 0 : i64, scratch_operands = 0 : i64, tpu.core_type = #tpu.core_type<tc>} {
    %c0 = arith.constant 0 : index
    %c0_0 = arith.constant 0 : index
    %0 = vector.load %arg0[%c0, %c0_0] : memref<64x4xf32, #tpu.memory_space<vmem>>, vector<64x4xf32>
    %c0_1 = arith.constant 0 : index
    %c0_2 = arith.constant 0 : index
    %1 = vector.load %arg1[%c0_1, %c0_2] : memref<4x96xf32, #tpu.memory_space<vmem>>, vector<4x96xf32>
    %cst = arith.constant dense<0.000000e+00> : vector<64x96xf32>
    %2 = tpu.matmul %0, %1, %cst {dimension_numbers = #tpu.dot_dimension_numbers<[1], [0], [0], [1], [0, 0, 1, 1], [], []>} : vector<64x4xf32>, vector<4x96xf32>, vector<64x96xf32> -> vector<64x96xf32>
    %c0_3 = arith.constant 0 : index
    %c0_4 = arith.constant 0 : index
    %3 = vector.load %arg4[%c0_3, %c0_4] : memref<1x96xf32, #tpu.memory_space<vmem>>, vector<1x96xf32>
    %4 = vector.broadcast %3 : vector<1x96xf32> to vector<64x96xf32>
    %5 = arith.addf %2, %4 : vector<64x96xf32>
    %c0_5 = arith.constant 0 : index
    %c0_6 = arith.constant 0 : index
    %6 = vector.load %arg2[%c0_5, %c0_6] : memref<32x96xf32, #tpu.memory_space<vmem>>, vector<32x96xf32>
    %c0_7 = arith.constant 0 : index
    %c0_8 = arith.constant 0 : index
    %7 = vector.load %arg3[%c0_7, %c0_8] : memref<64x128xf32, #tpu.memory_space<vmem>>, vector<64x128xf32>
    %c0_9 = arith.constant 0 : index
    %c0_10 = arith.constant 0 : index
    %8 = vector.load %arg5[%c0_9, %c0_10] : memref<1x96xf32, #tpu.memory_space<vmem>>, vector<1x96xf32>
    %c0_11 = arith.constant 0 : index
    %c0_12 = arith.constant 0 : index
    %9 = vector.load %arg6[%c0_11, %c0_12] : memref<1x128xf32, #tpu.memory_space<vmem>>, vector<1x128xf32>
    %cst_13 = arith.constant 0.000000e+00 : f32
    %10 = vector.broadcast %cst_13 : f32 to vector<8x32xf32>
    %cst_14 = arith.constant 0.000000e+00 : f32
    %11 = vector.broadcast %cst_14 : f32 to vector<8x32xf32>
    %12 = vector.extract_strided_slice %5 {offsets = [0, 0], sizes = [8, 96], strides = [1, 1]} : vector<64x96xf32> to vector<8x96xf32>
    %cst_15 = arith.constant dense<0.000000e+00> : vector<8x96xf32>
    %13 = tpu.matmul %10, %6, %cst_15 {dimension_numbers = #tpu.dot_dimension_numbers<[1], [0], [0], [1], [0, 0, 1, 1], [], []>} : vector<8x32xf32>, vector<32x96xf32>, vector<8x96xf32> -> vector<8x96xf32>
    %14 = vector.broadcast %8 : vector<1x96xf32> to vector<8x96xf32>
    %15 = arith.addf %13, %14 : vector<8x96xf32>
    %16 = vector.extract_strided_slice %12 {offsets = [0, 0], sizes = [8, 32], strides = [1, 1]} : vector<8x96xf32> to vector<8x32xf32>
    %17 = vector.extract_strided_slice %15 {offsets = [0, 0], sizes = [8, 32], strides = [1, 1]} : vector<8x96xf32> to vector<8x32xf32>
    %18 = arith.addf %16, %17 : vector<8x32xf32>
    %19 = arith.negf %18 : vector<8x32xf32>
    %20 = math.exp %19 : vector<8x32xf32>
    %cst_16 = arith.constant 1.000000e+00 : f32
    %21 = vector.broadcast %cst_16 : f32 to vector<8x32xf32>
    %22 = arith.addf %21, %20 : vector<8x32xf32>
    %23 = arith.divf %21, %22 : vector<8x32xf32>
    %24 = vector.extract_strided_slice %12 {offsets = [0, 32], sizes = [8, 32], strides = [1, 1]} : vector<8x96xf32> to vector<8x32xf32>
    %25 = vector.extract_strided_slice %15 {offsets = [0, 32], sizes = [8, 32], strides = [1, 1]} : vector<8x96xf32> to vector<8x32xf32>
    %26 = arith.addf %24, %25 : vector<8x32xf32>
    %27 = arith.negf %26 : vector<8x32xf32>
    %28 = math.exp %27 : vector<8x32xf32>
    %cst_17 = arith.constant 1.000000e+00 : f32
    %29 = vector.broadcast %cst_17 : f32 to vector<8x32xf32>
    %30 = arith.addf %29, %28 : vector<8x32xf32>
    %31 = arith.divf %29, %30 : vector<8x32xf32>
    %32 = vector.extract_strided_slice %12 {offsets = [0, 64], sizes = [8, 32], strides = [1, 1]} : vector<8x96xf32> to vector<8x32xf32>
    %33 = vector.extract_strided_slice %15 {offsets = [0, 64], sizes = [8, 32], strides = [1, 1]} : vector<8x96xf32> to vector<8x32xf32>
    %34 = arith.mulf %23, %33 : vector<8x32xf32>
    %35 = arith.addf %32, %34 : vector<8x32xf32>
    %36 = math.tanh %35 : vector<8x32xf32>
    %cst_18 = arith.constant 1.000000e+00 : f32
    %37 = vector.broadcast %cst_18 : f32 to vector<8x32xf32>
    %38 = arith.subf %37, %31 : vector<8x32xf32>
    %39 = arith.mulf %38, %36 : vector<8x32xf32>
    %40 = arith.mulf %31, %10 : vector<8x32xf32>
    %41 = arith.addf %39, %40 : vector<8x32xf32>
    %42 = tpu.concatenate %41, %11 in 1 : vector<8x32xf32>, vector<8x32xf32> -> vector<8x64xf32>
    %cst_19 = arith.constant dense<0.000000e+00> : vector<8x128xf32>
    %43 = tpu.matmul %42, %7, %cst_19 {dimension_numbers = #tpu.dot_dimension_numbers<[1], [0], [0], [1], [0, 0, 1, 1], [], []>} : vector<8x64xf32>, vector<64x128xf32>, vector<8x128xf32> -> vector<8x128xf32>
    %44 = vector.broadcast %9 : vector<1x128xf32> to vector<8x128xf32>
    %45 = arith.addf %43, %44 : vector<8x128xf32>
    %46 = vector.extract_strided_slice %45 {offsets = [0, 0], sizes = [8, 32], strides = [1, 1]} : vector<8x128xf32> to vector<8x32xf32>
    %47 = arith.negf %46 : vector<8x32xf32>
    %48 = math.exp %47 : vector<8x32xf32>
    %cst_20 = arith.constant 1.000000e+00 : f32
    %49 = vector.broadcast %cst_20 : f32 to vector<8x32xf32>
    %50 = arith.addf %49, %48 : vector<8x32xf32>
    %51 = arith.divf %49, %50 : vector<8x32xf32>
    %52 = vector.extract_strided_slice %45 {offsets = [0, 32], sizes = [8, 32], strides = [1, 1]} : vector<8x128xf32> to vector<8x32xf32>
    %53 = arith.negf %52 : vector<8x32xf32>
    %54 = math.exp %53 : vector<8x32xf32>
    %cst_21 = arith.constant 1.000000e+00 : f32
    %55 = vector.broadcast %cst_21 : f32 to vector<8x32xf32>
    %56 = arith.addf %55, %54 : vector<8x32xf32>
    %57 = arith.divf %55, %56 : vector<8x32xf32>
    %58 = vector.extract_strided_slice %45 {offsets = [0, 64], sizes = [8, 32], strides = [1, 1]} : vector<8x128xf32> to vector<8x32xf32>
    %59 = vector.extract_strided_slice %45 {offsets = [0, 96], sizes = [8, 32], strides = [1, 1]} : vector<8x128xf32> to vector<8x32xf32>
    %60 = arith.mulf %51, %59 : vector<8x32xf32>
    %61 = arith.addf %58, %60 : vector<8x32xf32>
    %62 = math.tanh %61 : vector<8x32xf32>
    %cst_22 = arith.constant 1.000000e+00 : f32
    %63 = vector.broadcast %cst_22 : f32 to vector<8x32xf32>
    %64 = arith.subf %63, %57 : vector<8x32xf32>
    %65 = arith.mulf %64, %62 : vector<8x32xf32>
    %66 = arith.mulf %57, %11 : vector<8x32xf32>
    %67 = arith.addf %65, %66 : vector<8x32xf32>
    %68 = vector.extract_strided_slice %5 {offsets = [8, 0], sizes = [8, 96], strides = [1, 1]} : vector<64x96xf32> to vector<8x96xf32>
    %cst_23 = arith.constant dense<0.000000e+00> : vector<8x96xf32>
    %69 = tpu.matmul %41, %6, %cst_23 {dimension_numbers = #tpu.dot_dimension_numbers<[1], [0], [0], [1], [0, 0, 1, 1], [], []>} : vector<8x32xf32>, vector<32x96xf32>, vector<8x96xf32> -> vector<8x96xf32>
    %70 = vector.broadcast %8 : vector<1x96xf32> to vector<8x96xf32>
    %71 = arith.addf %69, %70 : vector<8x96xf32>
    %72 = vector.extract_strided_slice %68 {offsets = [0, 0], sizes = [8, 32], strides = [1, 1]} : vector<8x96xf32> to vector<8x32xf32>
    %73 = vector.extract_strided_slice %71 {offsets = [0, 0], sizes = [8, 32], strides = [1, 1]} : vector<8x96xf32> to vector<8x32xf32>
    %74 = arith.addf %72, %73 : vector<8x32xf32>
    %75 = arith.negf %74 : vector<8x32xf32>
    %76 = math.exp %75 : vector<8x32xf32>
    %cst_24 = arith.constant 1.000000e+00 : f32
    %77 = vector.broadcast %cst_24 : f32 to vector<8x32xf32>
    %78 = arith.addf %77, %76 : vector<8x32xf32>
    %79 = arith.divf %77, %78 : vector<8x32xf32>
    %80 = vector.extract_strided_slice %68 {offsets = [0, 32], sizes = [8, 32], strides = [1, 1]} : vector<8x96xf32> to vector<8x32xf32>
    %81 = vector.extract_strided_slice %71 {offsets = [0, 32], sizes = [8, 32], strides = [1, 1]} : vector<8x96xf32> to vector<8x32xf32>
    %82 = arith.addf %80, %81 : vector<8x32xf32>
    %83 = arith.negf %82 : vector<8x32xf32>
    %84 = math.exp %83 : vector<8x32xf32>
    %cst_25 = arith.constant 1.000000e+00 : f32
    %85 = vector.broadcast %cst_25 : f32 to vector<8x32xf32>
    %86 = arith.addf %85, %84 : vector<8x32xf32>
    %87 = arith.divf %85, %86 : vector<8x32xf32>
    %88 = vector.extract_strided_slice %68 {offsets = [0, 64], sizes = [8, 32], strides = [1, 1]} : vector<8x96xf32> to vector<8x32xf32>
    %89 = vector.extract_strided_slice %71 {offsets = [0, 64], sizes = [8, 32], strides = [1, 1]} : vector<8x96xf32> to vector<8x32xf32>
    %90 = arith.mulf %79, %89 : vector<8x32xf32>
    %91 = arith.addf %88, %90 : vector<8x32xf32>
    %92 = math.tanh %91 : vector<8x32xf32>
    %cst_26 = arith.constant 1.000000e+00 : f32
    %93 = vector.broadcast %cst_26 : f32 to vector<8x32xf32>
    %94 = arith.subf %93, %87 : vector<8x32xf32>
    %95 = arith.mulf %94, %92 : vector<8x32xf32>
    %96 = arith.mulf %87, %41 : vector<8x32xf32>
    %97 = arith.addf %95, %96 : vector<8x32xf32>
    %98 = tpu.concatenate %97, %67 in 1 : vector<8x32xf32>, vector<8x32xf32> -> vector<8x64xf32>
    %cst_27 = arith.constant dense<0.000000e+00> : vector<8x128xf32>
    %99 = tpu.matmul %98, %7, %cst_27 {dimension_numbers = #tpu.dot_dimension_numbers<[1], [0], [0], [1], [0, 0, 1, 1], [], []>} : vector<8x64xf32>, vector<64x128xf32>, vector<8x128xf32> -> vector<8x128xf32>
    %100 = vector.broadcast %9 : vector<1x128xf32> to vector<8x128xf32>
    %101 = arith.addf %99, %100 : vector<8x128xf32>
    %102 = vector.extract_strided_slice %101 {offsets = [0, 0], sizes = [8, 32], strides = [1, 1]} : vector<8x128xf32> to vector<8x32xf32>
    %103 = arith.negf %102 : vector<8x32xf32>
    %104 = math.exp %103 : vector<8x32xf32>
    %cst_28 = arith.constant 1.000000e+00 : f32
    %105 = vector.broadcast %cst_28 : f32 to vector<8x32xf32>
    %106 = arith.addf %105, %104 : vector<8x32xf32>
    %107 = arith.divf %105, %106 : vector<8x32xf32>
    %108 = vector.extract_strided_slice %101 {offsets = [0, 32], sizes = [8, 32], strides = [1, 1]} : vector<8x128xf32> to vector<8x32xf32>
    %109 = arith.negf %108 : vector<8x32xf32>
    %110 = math.exp %109 : vector<8x32xf32>
    %cst_29 = arith.constant 1.000000e+00 : f32
    %111 = vector.broadcast %cst_29 : f32 to vector<8x32xf32>
    %112 = arith.addf %111, %110 : vector<8x32xf32>
    %113 = arith.divf %111, %112 : vector<8x32xf32>
    %114 = vector.extract_strided_slice %101 {offsets = [0, 64], sizes = [8, 32], strides = [1, 1]} : vector<8x128xf32> to vector<8x32xf32>
    %115 = vector.extract_strided_slice %101 {offsets = [0, 96], sizes = [8, 32], strides = [1, 1]} : vector<8x128xf32> to vector<8x32xf32>
    %116 = arith.mulf %107, %115 : vector<8x32xf32>
    %117 = arith.addf %114, %116 : vector<8x32xf32>
    %118 = math.tanh %117 : vector<8x32xf32>
    %cst_30 = arith.constant 1.000000e+00 : f32
    %119 = vector.broadcast %cst_30 : f32 to vector<8x32xf32>
    %120 = arith.subf %119, %113 : vector<8x32xf32>
    %121 = arith.mulf %120, %118 : vector<8x32xf32>
    %122 = arith.mulf %113, %67 : vector<8x32xf32>
    %123 = arith.addf %121, %122 : vector<8x32xf32>
    %124 = vector.extract_strided_slice %5 {offsets = [16, 0], sizes = [8, 96], strides = [1, 1]} : vector<64x96xf32> to vector<8x96xf32>
    %cst_31 = arith.constant dense<0.000000e+00> : vector<8x96xf32>
    %125 = tpu.matmul %97, %6, %cst_31 {dimension_numbers = #tpu.dot_dimension_numbers<[1], [0], [0], [1], [0, 0, 1, 1], [], []>} : vector<8x32xf32>, vector<32x96xf32>, vector<8x96xf32> -> vector<8x96xf32>
    %126 = vector.broadcast %8 : vector<1x96xf32> to vector<8x96xf32>
    %127 = arith.addf %125, %126 : vector<8x96xf32>
    %128 = vector.extract_strided_slice %124 {offsets = [0, 0], sizes = [8, 32], strides = [1, 1]} : vector<8x96xf32> to vector<8x32xf32>
    %129 = vector.extract_strided_slice %127 {offsets = [0, 0], sizes = [8, 32], strides = [1, 1]} : vector<8x96xf32> to vector<8x32xf32>
    %130 = arith.addf %128, %129 : vector<8x32xf32>
    %131 = arith.negf %130 : vector<8x32xf32>
    %132 = math.exp %131 : vector<8x32xf32>
    %cst_32 = arith.constant 1.000000e+00 : f32
    %133 = vector.broadcast %cst_32 : f32 to vector<8x32xf32>
    %134 = arith.addf %133, %132 : vector<8x32xf32>
    %135 = arith.divf %133, %134 : vector<8x32xf32>
    %136 = vector.extract_strided_slice %124 {offsets = [0, 32], sizes = [8, 32], strides = [1, 1]} : vector<8x96xf32> to vector<8x32xf32>
    %137 = vector.extract_strided_slice %127 {offsets = [0, 32], sizes = [8, 32], strides = [1, 1]} : vector<8x96xf32> to vector<8x32xf32>
    %138 = arith.addf %136, %137 : vector<8x32xf32>
    %139 = arith.negf %138 : vector<8x32xf32>
    %140 = math.exp %139 : vector<8x32xf32>
    %cst_33 = arith.constant 1.000000e+00 : f32
    %141 = vector.broadcast %cst_33 : f32 to vector<8x32xf32>
    %142 = arith.addf %141, %140 : vector<8x32xf32>
    %143 = arith.divf %141, %142 : vector<8x32xf32>
    %144 = vector.extract_strided_slice %124 {offsets = [0, 64], sizes = [8, 32], strides = [1, 1]} : vector<8x96xf32> to vector<8x32xf32>
    %145 = vector.extract_strided_slice %127 {offsets = [0, 64], sizes = [8, 32], strides = [1, 1]} : vector<8x96xf32> to vector<8x32xf32>
    %146 = arith.mulf %135, %145 : vector<8x32xf32>
    %147 = arith.addf %144, %146 : vector<8x32xf32>
    %148 = math.tanh %147 : vector<8x32xf32>
    %cst_34 = arith.constant 1.000000e+00 : f32
    %149 = vector.broadcast %cst_34 : f32 to vector<8x32xf32>
    %150 = arith.subf %149, %143 : vector<8x32xf32>
    %151 = arith.mulf %150, %148 : vector<8x32xf32>
    %152 = arith.mulf %143, %97 : vector<8x32xf32>
    %153 = arith.addf %151, %152 : vector<8x32xf32>
    %154 = tpu.concatenate %153, %123 in 1 : vector<8x32xf32>, vector<8x32xf32> -> vector<8x64xf32>
    %cst_35 = arith.constant dense<0.000000e+00> : vector<8x128xf32>
    %155 = tpu.matmul %154, %7, %cst_35 {dimension_numbers = #tpu.dot_dimension_numbers<[1], [0], [0], [1], [0, 0, 1, 1], [], []>} : vector<8x64xf32>, vector<64x128xf32>, vector<8x128xf32> -> vector<8x128xf32>
    %156 = vector.broadcast %9 : vector<1x128xf32> to vector<8x128xf32>
    %157 = arith.addf %155, %156 : vector<8x128xf32>
    %158 = vector.extract_strided_slice %157 {offsets = [0, 0], sizes = [8, 32], strides = [1, 1]} : vector<8x128xf32> to vector<8x32xf32>
    %159 = arith.negf %158 : vector<8x32xf32>
    %160 = math.exp %159 : vector<8x32xf32>
    %cst_36 = arith.constant 1.000000e+00 : f32
    %161 = vector.broadcast %cst_36 : f32 to vector<8x32xf32>
    %162 = arith.addf %161, %160 : vector<8x32xf32>
    %163 = arith.divf %161, %162 : vector<8x32xf32>
    %164 = vector.extract_strided_slice %157 {offsets = [0, 32], sizes = [8, 32], strides = [1, 1]} : vector<8x128xf32> to vector<8x32xf32>
    %165 = arith.negf %164 : vector<8x32xf32>
    %166 = math.exp %165 : vector<8x32xf32>
    %cst_37 = arith.constant 1.000000e+00 : f32
    %167 = vector.broadcast %cst_37 : f32 to vector<8x32xf32>
    %168 = arith.addf %167, %166 : vector<8x32xf32>
    %169 = arith.divf %167, %168 : vector<8x32xf32>
    %170 = vector.extract_strided_slice %157 {offsets = [0, 64], sizes = [8, 32], strides = [1, 1]} : vector<8x128xf32> to vector<8x32xf32>
    %171 = vector.extract_strided_slice %157 {offsets = [0, 96], sizes = [8, 32], strides = [1, 1]} : vector<8x128xf32> to vector<8x32xf32>
    %172 = arith.mulf %163, %171 : vector<8x32xf32>
    %173 = arith.addf %170, %172 : vector<8x32xf32>
    %174 = math.tanh %173 : vector<8x32xf32>
    %cst_38 = arith.constant 1.000000e+00 : f32
    %175 = vector.broadcast %cst_38 : f32 to vector<8x32xf32>
    %176 = arith.subf %175, %169 : vector<8x32xf32>
    %177 = arith.mulf %176, %174 : vector<8x32xf32>
    %178 = arith.mulf %169, %123 : vector<8x32xf32>
    %179 = arith.addf %177, %178 : vector<8x32xf32>
    %180 = vector.extract_strided_slice %5 {offsets = [24, 0], sizes = [8, 96], strides = [1, 1]} : vector<64x96xf32> to vector<8x96xf32>
    %cst_39 = arith.constant dense<0.000000e+00> : vector<8x96xf32>
    %181 = tpu.matmul %153, %6, %cst_39 {dimension_numbers = #tpu.dot_dimension_numbers<[1], [0], [0], [1], [0, 0, 1, 1], [], []>} : vector<8x32xf32>, vector<32x96xf32>, vector<8x96xf32> -> vector<8x96xf32>
    %182 = vector.broadcast %8 : vector<1x96xf32> to vector<8x96xf32>
    %183 = arith.addf %181, %182 : vector<8x96xf32>
    %184 = vector.extract_strided_slice %180 {offsets = [0, 0], sizes = [8, 32], strides = [1, 1]} : vector<8x96xf32> to vector<8x32xf32>
    %185 = vector.extract_strided_slice %183 {offsets = [0, 0], sizes = [8, 32], strides = [1, 1]} : vector<8x96xf32> to vector<8x32xf32>
    %186 = arith.addf %184, %185 : vector<8x32xf32>
    %187 = arith.negf %186 : vector<8x32xf32>
    %188 = math.exp %187 : vector<8x32xf32>
    %cst_40 = arith.constant 1.000000e+00 : f32
    %189 = vector.broadcast %cst_40 : f32 to vector<8x32xf32>
    %190 = arith.addf %189, %188 : vector<8x32xf32>
    %191 = arith.divf %189, %190 : vector<8x32xf32>
    %192 = vector.extract_strided_slice %180 {offsets = [0, 32], sizes = [8, 32], strides = [1, 1]} : vector<8x96xf32> to vector<8x32xf32>
    %193 = vector.extract_strided_slice %183 {offsets = [0, 32], sizes = [8, 32], strides = [1, 1]} : vector<8x96xf32> to vector<8x32xf32>
    %194 = arith.addf %192, %193 : vector<8x32xf32>
    %195 = arith.negf %194 : vector<8x32xf32>
    %196 = math.exp %195 : vector<8x32xf32>
    %cst_41 = arith.constant 1.000000e+00 : f32
    %197 = vector.broadcast %cst_41 : f32 to vector<8x32xf32>
    %198 = arith.addf %197, %196 : vector<8x32xf32>
    %199 = arith.divf %197, %198 : vector<8x32xf32>
    %200 = vector.extract_strided_slice %180 {offsets = [0, 64], sizes = [8, 32], strides = [1, 1]} : vector<8x96xf32> to vector<8x32xf32>
    %201 = vector.extract_strided_slice %183 {offsets = [0, 64], sizes = [8, 32], strides = [1, 1]} : vector<8x96xf32> to vector<8x32xf32>
    %202 = arith.mulf %191, %201 : vector<8x32xf32>
    %203 = arith.addf %200, %202 : vector<8x32xf32>
    %204 = math.tanh %203 : vector<8x32xf32>
    %cst_42 = arith.constant 1.000000e+00 : f32
    %205 = vector.broadcast %cst_42 : f32 to vector<8x32xf32>
    %206 = arith.subf %205, %199 : vector<8x32xf32>
    %207 = arith.mulf %206, %204 : vector<8x32xf32>
    %208 = arith.mulf %199, %153 : vector<8x32xf32>
    %209 = arith.addf %207, %208 : vector<8x32xf32>
    %210 = tpu.concatenate %209, %179 in 1 : vector<8x32xf32>, vector<8x32xf32> -> vector<8x64xf32>
    %cst_43 = arith.constant dense<0.000000e+00> : vector<8x128xf32>
    %211 = tpu.matmul %210, %7, %cst_43 {dimension_numbers = #tpu.dot_dimension_numbers<[1], [0], [0], [1], [0, 0, 1, 1], [], []>} : vector<8x64xf32>, vector<64x128xf32>, vector<8x128xf32> -> vector<8x128xf32>
    %212 = vector.broadcast %9 : vector<1x128xf32> to vector<8x128xf32>
    %213 = arith.addf %211, %212 : vector<8x128xf32>
    %214 = vector.extract_strided_slice %213 {offsets = [0, 0], sizes = [8, 32], strides = [1, 1]} : vector<8x128xf32> to vector<8x32xf32>
    %215 = arith.negf %214 : vector<8x32xf32>
    %216 = math.exp %215 : vector<8x32xf32>
    %cst_44 = arith.constant 1.000000e+00 : f32
    %217 = vector.broadcast %cst_44 : f32 to vector<8x32xf32>
    %218 = arith.addf %217, %216 : vector<8x32xf32>
    %219 = arith.divf %217, %218 : vector<8x32xf32>
    %220 = vector.extract_strided_slice %213 {offsets = [0, 32], sizes = [8, 32], strides = [1, 1]} : vector<8x128xf32> to vector<8x32xf32>
    %221 = arith.negf %220 : vector<8x32xf32>
    %222 = math.exp %221 : vector<8x32xf32>
    %cst_45 = arith.constant 1.000000e+00 : f32
    %223 = vector.broadcast %cst_45 : f32 to vector<8x32xf32>
    %224 = arith.addf %223, %222 : vector<8x32xf32>
    %225 = arith.divf %223, %224 : vector<8x32xf32>
    %226 = vector.extract_strided_slice %213 {offsets = [0, 64], sizes = [8, 32], strides = [1, 1]} : vector<8x128xf32> to vector<8x32xf32>
    %227 = vector.extract_strided_slice %213 {offsets = [0, 96], sizes = [8, 32], strides = [1, 1]} : vector<8x128xf32> to vector<8x32xf32>
    %228 = arith.mulf %219, %227 : vector<8x32xf32>
    %229 = arith.addf %226, %228 : vector<8x32xf32>
    %230 = math.tanh %229 : vector<8x32xf32>
    %cst_46 = arith.constant 1.000000e+00 : f32
    %231 = vector.broadcast %cst_46 : f32 to vector<8x32xf32>
    %232 = arith.subf %231, %225 : vector<8x32xf32>
    %233 = arith.mulf %232, %230 : vector<8x32xf32>
    %234 = arith.mulf %225, %179 : vector<8x32xf32>
    %235 = arith.addf %233, %234 : vector<8x32xf32>
    %236 = vector.extract_strided_slice %5 {offsets = [32, 0], sizes = [8, 96], strides = [1, 1]} : vector<64x96xf32> to vector<8x96xf32>
    %cst_47 = arith.constant dense<0.000000e+00> : vector<8x96xf32>
    %237 = tpu.matmul %209, %6, %cst_47 {dimension_numbers = #tpu.dot_dimension_numbers<[1], [0], [0], [1], [0, 0, 1, 1], [], []>} : vector<8x32xf32>, vector<32x96xf32>, vector<8x96xf32> -> vector<8x96xf32>
    %238 = vector.broadcast %8 : vector<1x96xf32> to vector<8x96xf32>
    %239 = arith.addf %237, %238 : vector<8x96xf32>
    %240 = vector.extract_strided_slice %236 {offsets = [0, 0], sizes = [8, 32], strides = [1, 1]} : vector<8x96xf32> to vector<8x32xf32>
    %241 = vector.extract_strided_slice %239 {offsets = [0, 0], sizes = [8, 32], strides = [1, 1]} : vector<8x96xf32> to vector<8x32xf32>
    %242 = arith.addf %240, %241 : vector<8x32xf32>
    %243 = arith.negf %242 : vector<8x32xf32>
    %244 = math.exp %243 : vector<8x32xf32>
    %cst_48 = arith.constant 1.000000e+00 : f32
    %245 = vector.broadcast %cst_48 : f32 to vector<8x32xf32>
    %246 = arith.addf %245, %244 : vector<8x32xf32>
    %247 = arith.divf %245, %246 : vector<8x32xf32>
    %248 = vector.extract_strided_slice %236 {offsets = [0, 32], sizes = [8, 32], strides = [1, 1]} : vector<8x96xf32> to vector<8x32xf32>
    %249 = vector.extract_strided_slice %239 {offsets = [0, 32], sizes = [8, 32], strides = [1, 1]} : vector<8x96xf32> to vector<8x32xf32>
    %250 = arith.addf %248, %249 : vector<8x32xf32>
    %251 = arith.negf %250 : vector<8x32xf32>
    %252 = math.exp %251 : vector<8x32xf32>
    %cst_49 = arith.constant 1.000000e+00 : f32
    %253 = vector.broadcast %cst_49 : f32 to vector<8x32xf32>
    %254 = arith.addf %253, %252 : vector<8x32xf32>
    %255 = arith.divf %253, %254 : vector<8x32xf32>
    %256 = vector.extract_strided_slice %236 {offsets = [0, 64], sizes = [8, 32], strides = [1, 1]} : vector<8x96xf32> to vector<8x32xf32>
    %257 = vector.extract_strided_slice %239 {offsets = [0, 64], sizes = [8, 32], strides = [1, 1]} : vector<8x96xf32> to vector<8x32xf32>
    %258 = arith.mulf %247, %257 : vector<8x32xf32>
    %259 = arith.addf %256, %258 : vector<8x32xf32>
    %260 = math.tanh %259 : vector<8x32xf32>
    %cst_50 = arith.constant 1.000000e+00 : f32
    %261 = vector.broadcast %cst_50 : f32 to vector<8x32xf32>
    %262 = arith.subf %261, %255 : vector<8x32xf32>
    %263 = arith.mulf %262, %260 : vector<8x32xf32>
    %264 = arith.mulf %255, %209 : vector<8x32xf32>
    %265 = arith.addf %263, %264 : vector<8x32xf32>
    %266 = tpu.concatenate %265, %235 in 1 : vector<8x32xf32>, vector<8x32xf32> -> vector<8x64xf32>
    %cst_51 = arith.constant dense<0.000000e+00> : vector<8x128xf32>
    %267 = tpu.matmul %266, %7, %cst_51 {dimension_numbers = #tpu.dot_dimension_numbers<[1], [0], [0], [1], [0, 0, 1, 1], [], []>} : vector<8x64xf32>, vector<64x128xf32>, vector<8x128xf32> -> vector<8x128xf32>
    %268 = vector.broadcast %9 : vector<1x128xf32> to vector<8x128xf32>
    %269 = arith.addf %267, %268 : vector<8x128xf32>
    %270 = vector.extract_strided_slice %269 {offsets = [0, 0], sizes = [8, 32], strides = [1, 1]} : vector<8x128xf32> to vector<8x32xf32>
    %271 = arith.negf %270 : vector<8x32xf32>
    %272 = math.exp %271 : vector<8x32xf32>
    %cst_52 = arith.constant 1.000000e+00 : f32
    %273 = vector.broadcast %cst_52 : f32 to vector<8x32xf32>
    %274 = arith.addf %273, %272 : vector<8x32xf32>
    %275 = arith.divf %273, %274 : vector<8x32xf32>
    %276 = vector.extract_strided_slice %269 {offsets = [0, 32], sizes = [8, 32], strides = [1, 1]} : vector<8x128xf32> to vector<8x32xf32>
    %277 = arith.negf %276 : vector<8x32xf32>
    %278 = math.exp %277 : vector<8x32xf32>
    %cst_53 = arith.constant 1.000000e+00 : f32
    %279 = vector.broadcast %cst_53 : f32 to vector<8x32xf32>
    %280 = arith.addf %279, %278 : vector<8x32xf32>
    %281 = arith.divf %279, %280 : vector<8x32xf32>
    %282 = vector.extract_strided_slice %269 {offsets = [0, 64], sizes = [8, 32], strides = [1, 1]} : vector<8x128xf32> to vector<8x32xf32>
    %283 = vector.extract_strided_slice %269 {offsets = [0, 96], sizes = [8, 32], strides = [1, 1]} : vector<8x128xf32> to vector<8x32xf32>
    %284 = arith.mulf %275, %283 : vector<8x32xf32>
    %285 = arith.addf %282, %284 : vector<8x32xf32>
    %286 = math.tanh %285 : vector<8x32xf32>
    %cst_54 = arith.constant 1.000000e+00 : f32
    %287 = vector.broadcast %cst_54 : f32 to vector<8x32xf32>
    %288 = arith.subf %287, %281 : vector<8x32xf32>
    %289 = arith.mulf %288, %286 : vector<8x32xf32>
    %290 = arith.mulf %281, %235 : vector<8x32xf32>
    %291 = arith.addf %289, %290 : vector<8x32xf32>
    %292 = vector.extract_strided_slice %5 {offsets = [40, 0], sizes = [8, 96], strides = [1, 1]} : vector<64x96xf32> to vector<8x96xf32>
    %cst_55 = arith.constant dense<0.000000e+00> : vector<8x96xf32>
    %293 = tpu.matmul %265, %6, %cst_55 {dimension_numbers = #tpu.dot_dimension_numbers<[1], [0], [0], [1], [0, 0, 1, 1], [], []>} : vector<8x32xf32>, vector<32x96xf32>, vector<8x96xf32> -> vector<8x96xf32>
    %294 = vector.broadcast %8 : vector<1x96xf32> to vector<8x96xf32>
    %295 = arith.addf %293, %294 : vector<8x96xf32>
    %296 = vector.extract_strided_slice %292 {offsets = [0, 0], sizes = [8, 32], strides = [1, 1]} : vector<8x96xf32> to vector<8x32xf32>
    %297 = vector.extract_strided_slice %295 {offsets = [0, 0], sizes = [8, 32], strides = [1, 1]} : vector<8x96xf32> to vector<8x32xf32>
    %298 = arith.addf %296, %297 : vector<8x32xf32>
    %299 = arith.negf %298 : vector<8x32xf32>
    %300 = math.exp %299 : vector<8x32xf32>
    %cst_56 = arith.constant 1.000000e+00 : f32
    %301 = vector.broadcast %cst_56 : f32 to vector<8x32xf32>
    %302 = arith.addf %301, %300 : vector<8x32xf32>
    %303 = arith.divf %301, %302 : vector<8x32xf32>
    %304 = vector.extract_strided_slice %292 {offsets = [0, 32], sizes = [8, 32], strides = [1, 1]} : vector<8x96xf32> to vector<8x32xf32>
    %305 = vector.extract_strided_slice %295 {offsets = [0, 32], sizes = [8, 32], strides = [1, 1]} : vector<8x96xf32> to vector<8x32xf32>
    %306 = arith.addf %304, %305 : vector<8x32xf32>
    %307 = arith.negf %306 : vector<8x32xf32>
    %308 = math.exp %307 : vector<8x32xf32>
    %cst_57 = arith.constant 1.000000e+00 : f32
    %309 = vector.broadcast %cst_57 : f32 to vector<8x32xf32>
    %310 = arith.addf %309, %308 : vector<8x32xf32>
    %311 = arith.divf %309, %310 : vector<8x32xf32>
    %312 = vector.extract_strided_slice %292 {offsets = [0, 64], sizes = [8, 32], strides = [1, 1]} : vector<8x96xf32> to vector<8x32xf32>
    %313 = vector.extract_strided_slice %295 {offsets = [0, 64], sizes = [8, 32], strides = [1, 1]} : vector<8x96xf32> to vector<8x32xf32>
    %314 = arith.mulf %303, %313 : vector<8x32xf32>
    %315 = arith.addf %312, %314 : vector<8x32xf32>
    %316 = math.tanh %315 : vector<8x32xf32>
    %cst_58 = arith.constant 1.000000e+00 : f32
    %317 = vector.broadcast %cst_58 : f32 to vector<8x32xf32>
    %318 = arith.subf %317, %311 : vector<8x32xf32>
    %319 = arith.mulf %318, %316 : vector<8x32xf32>
    %320 = arith.mulf %311, %265 : vector<8x32xf32>
    %321 = arith.addf %319, %320 : vector<8x32xf32>
    %322 = tpu.concatenate %321, %291 in 1 : vector<8x32xf32>, vector<8x32xf32> -> vector<8x64xf32>
    %cst_59 = arith.constant dense<0.000000e+00> : vector<8x128xf32>
    %323 = tpu.matmul %322, %7, %cst_59 {dimension_numbers = #tpu.dot_dimension_numbers<[1], [0], [0], [1], [0, 0, 1, 1], [], []>} : vector<8x64xf32>, vector<64x128xf32>, vector<8x128xf32> -> vector<8x128xf32>
    %324 = vector.broadcast %9 : vector<1x128xf32> to vector<8x128xf32>
    %325 = arith.addf %323, %324 : vector<8x128xf32>
    %326 = vector.extract_strided_slice %325 {offsets = [0, 0], sizes = [8, 32], strides = [1, 1]} : vector<8x128xf32> to vector<8x32xf32>
    %327 = arith.negf %326 : vector<8x32xf32>
    %328 = math.exp %327 : vector<8x32xf32>
    %cst_60 = arith.constant 1.000000e+00 : f32
    %329 = vector.broadcast %cst_60 : f32 to vector<8x32xf32>
    %330 = arith.addf %329, %328 : vector<8x32xf32>
    %331 = arith.divf %329, %330 : vector<8x32xf32>
    %332 = vector.extract_strided_slice %325 {offsets = [0, 32], sizes = [8, 32], strides = [1, 1]} : vector<8x128xf32> to vector<8x32xf32>
    %333 = arith.negf %332 : vector<8x32xf32>
    %334 = math.exp %333 : vector<8x32xf32>
    %cst_61 = arith.constant 1.000000e+00 : f32
    %335 = vector.broadcast %cst_61 : f32 to vector<8x32xf32>
    %336 = arith.addf %335, %334 : vector<8x32xf32>
    %337 = arith.divf %335, %336 : vector<8x32xf32>
    %338 = vector.extract_strided_slice %325 {offsets = [0, 64], sizes = [8, 32], strides = [1, 1]} : vector<8x128xf32> to vector<8x32xf32>
    %339 = vector.extract_strided_slice %325 {offsets = [0, 96], sizes = [8, 32], strides = [1, 1]} : vector<8x128xf32> to vector<8x32xf32>
    %340 = arith.mulf %331, %339 : vector<8x32xf32>
    %341 = arith.addf %338, %340 : vector<8x32xf32>
    %342 = math.tanh %341 : vector<8x32xf32>
    %cst_62 = arith.constant 1.000000e+00 : f32
    %343 = vector.broadcast %cst_62 : f32 to vector<8x32xf32>
    %344 = arith.subf %343, %337 : vector<8x32xf32>
    %345 = arith.mulf %344, %342 : vector<8x32xf32>
    %346 = arith.mulf %337, %291 : vector<8x32xf32>
    %347 = arith.addf %345, %346 : vector<8x32xf32>
    %348 = vector.extract_strided_slice %5 {offsets = [48, 0], sizes = [8, 96], strides = [1, 1]} : vector<64x96xf32> to vector<8x96xf32>
    %cst_63 = arith.constant dense<0.000000e+00> : vector<8x96xf32>
    %349 = tpu.matmul %321, %6, %cst_63 {dimension_numbers = #tpu.dot_dimension_numbers<[1], [0], [0], [1], [0, 0, 1, 1], [], []>} : vector<8x32xf32>, vector<32x96xf32>, vector<8x96xf32> -> vector<8x96xf32>
    %350 = vector.broadcast %8 : vector<1x96xf32> to vector<8x96xf32>
    %351 = arith.addf %349, %350 : vector<8x96xf32>
    %352 = vector.extract_strided_slice %348 {offsets = [0, 0], sizes = [8, 32], strides = [1, 1]} : vector<8x96xf32> to vector<8x32xf32>
    %353 = vector.extract_strided_slice %351 {offsets = [0, 0], sizes = [8, 32], strides = [1, 1]} : vector<8x96xf32> to vector<8x32xf32>
    %354 = arith.addf %352, %353 : vector<8x32xf32>
    %355 = arith.negf %354 : vector<8x32xf32>
    %356 = math.exp %355 : vector<8x32xf32>
    %cst_64 = arith.constant 1.000000e+00 : f32
    %357 = vector.broadcast %cst_64 : f32 to vector<8x32xf32>
    %358 = arith.addf %357, %356 : vector<8x32xf32>
    %359 = arith.divf %357, %358 : vector<8x32xf32>
    %360 = vector.extract_strided_slice %348 {offsets = [0, 32], sizes = [8, 32], strides = [1, 1]} : vector<8x96xf32> to vector<8x32xf32>
    %361 = vector.extract_strided_slice %351 {offsets = [0, 32], sizes = [8, 32], strides = [1, 1]} : vector<8x96xf32> to vector<8x32xf32>
    %362 = arith.addf %360, %361 : vector<8x32xf32>
    %363 = arith.negf %362 : vector<8x32xf32>
    %364 = math.exp %363 : vector<8x32xf32>
    %cst_65 = arith.constant 1.000000e+00 : f32
    %365 = vector.broadcast %cst_65 : f32 to vector<8x32xf32>
    %366 = arith.addf %365, %364 : vector<8x32xf32>
    %367 = arith.divf %365, %366 : vector<8x32xf32>
    %368 = vector.extract_strided_slice %348 {offsets = [0, 64], sizes = [8, 32], strides = [1, 1]} : vector<8x96xf32> to vector<8x32xf32>
    %369 = vector.extract_strided_slice %351 {offsets = [0, 64], sizes = [8, 32], strides = [1, 1]} : vector<8x96xf32> to vector<8x32xf32>
    %370 = arith.mulf %359, %369 : vector<8x32xf32>
    %371 = arith.addf %368, %370 : vector<8x32xf32>
    %372 = math.tanh %371 : vector<8x32xf32>
    %cst_66 = arith.constant 1.000000e+00 : f32
    %373 = vector.broadcast %cst_66 : f32 to vector<8x32xf32>
    %374 = arith.subf %373, %367 : vector<8x32xf32>
    %375 = arith.mulf %374, %372 : vector<8x32xf32>
    %376 = arith.mulf %367, %321 : vector<8x32xf32>
    %377 = arith.addf %375, %376 : vector<8x32xf32>
    %378 = tpu.concatenate %377, %347 in 1 : vector<8x32xf32>, vector<8x32xf32> -> vector<8x64xf32>
    %cst_67 = arith.constant dense<0.000000e+00> : vector<8x128xf32>
    %379 = tpu.matmul %378, %7, %cst_67 {dimension_numbers = #tpu.dot_dimension_numbers<[1], [0], [0], [1], [0, 0, 1, 1], [], []>} : vector<8x64xf32>, vector<64x128xf32>, vector<8x128xf32> -> vector<8x128xf32>
    %380 = vector.broadcast %9 : vector<1x128xf32> to vector<8x128xf32>
    %381 = arith.addf %379, %380 : vector<8x128xf32>
    %382 = vector.extract_strided_slice %381 {offsets = [0, 0], sizes = [8, 32], strides = [1, 1]} : vector<8x128xf32> to vector<8x32xf32>
    %383 = arith.negf %382 : vector<8x32xf32>
    %384 = math.exp %383 : vector<8x32xf32>
    %cst_68 = arith.constant 1.000000e+00 : f32
    %385 = vector.broadcast %cst_68 : f32 to vector<8x32xf32>
    %386 = arith.addf %385, %384 : vector<8x32xf32>
    %387 = arith.divf %385, %386 : vector<8x32xf32>
    %388 = vector.extract_strided_slice %381 {offsets = [0, 32], sizes = [8, 32], strides = [1, 1]} : vector<8x128xf32> to vector<8x32xf32>
    %389 = arith.negf %388 : vector<8x32xf32>
    %390 = math.exp %389 : vector<8x32xf32>
    %cst_69 = arith.constant 1.000000e+00 : f32
    %391 = vector.broadcast %cst_69 : f32 to vector<8x32xf32>
    %392 = arith.addf %391, %390 : vector<8x32xf32>
    %393 = arith.divf %391, %392 : vector<8x32xf32>
    %394 = vector.extract_strided_slice %381 {offsets = [0, 64], sizes = [8, 32], strides = [1, 1]} : vector<8x128xf32> to vector<8x32xf32>
    %395 = vector.extract_strided_slice %381 {offsets = [0, 96], sizes = [8, 32], strides = [1, 1]} : vector<8x128xf32> to vector<8x32xf32>
    %396 = arith.mulf %387, %395 : vector<8x32xf32>
    %397 = arith.addf %394, %396 : vector<8x32xf32>
    %398 = math.tanh %397 : vector<8x32xf32>
    %cst_70 = arith.constant 1.000000e+00 : f32
    %399 = vector.broadcast %cst_70 : f32 to vector<8x32xf32>
    %400 = arith.subf %399, %393 : vector<8x32xf32>
    %401 = arith.mulf %400, %398 : vector<8x32xf32>
    %402 = arith.mulf %393, %347 : vector<8x32xf32>
    %403 = arith.addf %401, %402 : vector<8x32xf32>
    %404 = vector.extract_strided_slice %5 {offsets = [56, 0], sizes = [8, 96], strides = [1, 1]} : vector<64x96xf32> to vector<8x96xf32>
    %cst_71 = arith.constant dense<0.000000e+00> : vector<8x96xf32>
    %405 = tpu.matmul %377, %6, %cst_71 {dimension_numbers = #tpu.dot_dimension_numbers<[1], [0], [0], [1], [0, 0, 1, 1], [], []>} : vector<8x32xf32>, vector<32x96xf32>, vector<8x96xf32> -> vector<8x96xf32>
    %406 = vector.broadcast %8 : vector<1x96xf32> to vector<8x96xf32>
    %407 = arith.addf %405, %406 : vector<8x96xf32>
    %408 = vector.extract_strided_slice %404 {offsets = [0, 0], sizes = [8, 32], strides = [1, 1]} : vector<8x96xf32> to vector<8x32xf32>
    %409 = vector.extract_strided_slice %407 {offsets = [0, 0], sizes = [8, 32], strides = [1, 1]} : vector<8x96xf32> to vector<8x32xf32>
    %410 = arith.addf %408, %409 : vector<8x32xf32>
    %411 = arith.negf %410 : vector<8x32xf32>
    %412 = math.exp %411 : vector<8x32xf32>
    %cst_72 = arith.constant 1.000000e+00 : f32
    %413 = vector.broadcast %cst_72 : f32 to vector<8x32xf32>
    %414 = arith.addf %413, %412 : vector<8x32xf32>
    %415 = arith.divf %413, %414 : vector<8x32xf32>
    %416 = vector.extract_strided_slice %404 {offsets = [0, 32], sizes = [8, 32], strides = [1, 1]} : vector<8x96xf32> to vector<8x32xf32>
    %417 = vector.extract_strided_slice %407 {offsets = [0, 32], sizes = [8, 32], strides = [1, 1]} : vector<8x96xf32> to vector<8x32xf32>
    %418 = arith.addf %416, %417 : vector<8x32xf32>
    %419 = arith.negf %418 : vector<8x32xf32>
    %420 = math.exp %419 : vector<8x32xf32>
    %cst_73 = arith.constant 1.000000e+00 : f32
    %421 = vector.broadcast %cst_73 : f32 to vector<8x32xf32>
    %422 = arith.addf %421, %420 : vector<8x32xf32>
    %423 = arith.divf %421, %422 : vector<8x32xf32>
    %424 = vector.extract_strided_slice %404 {offsets = [0, 64], sizes = [8, 32], strides = [1, 1]} : vector<8x96xf32> to vector<8x32xf32>
    %425 = vector.extract_strided_slice %407 {offsets = [0, 64], sizes = [8, 32], strides = [1, 1]} : vector<8x96xf32> to vector<8x32xf32>
    %426 = arith.mulf %415, %425 : vector<8x32xf32>
    %427 = arith.addf %424, %426 : vector<8x32xf32>
    %428 = math.tanh %427 : vector<8x32xf32>
    %cst_74 = arith.constant 1.000000e+00 : f32
    %429 = vector.broadcast %cst_74 : f32 to vector<8x32xf32>
    %430 = arith.subf %429, %423 : vector<8x32xf32>
    %431 = arith.mulf %430, %428 : vector<8x32xf32>
    %432 = arith.mulf %423, %377 : vector<8x32xf32>
    %433 = arith.addf %431, %432 : vector<8x32xf32>
    %434 = tpu.concatenate %433, %403 in 1 : vector<8x32xf32>, vector<8x32xf32> -> vector<8x64xf32>
    %cst_75 = arith.constant dense<0.000000e+00> : vector<8x128xf32>
    %435 = tpu.matmul %434, %7, %cst_75 {dimension_numbers = #tpu.dot_dimension_numbers<[1], [0], [0], [1], [0, 0, 1, 1], [], []>} : vector<8x64xf32>, vector<64x128xf32>, vector<8x128xf32> -> vector<8x128xf32>
    %436 = vector.broadcast %9 : vector<1x128xf32> to vector<8x128xf32>
    %437 = arith.addf %435, %436 : vector<8x128xf32>
    %438 = vector.extract_strided_slice %437 {offsets = [0, 0], sizes = [8, 32], strides = [1, 1]} : vector<8x128xf32> to vector<8x32xf32>
    %439 = arith.negf %438 : vector<8x32xf32>
    %440 = math.exp %439 : vector<8x32xf32>
    %cst_76 = arith.constant 1.000000e+00 : f32
    %441 = vector.broadcast %cst_76 : f32 to vector<8x32xf32>
    %442 = arith.addf %441, %440 : vector<8x32xf32>
    %443 = arith.divf %441, %442 : vector<8x32xf32>
    %444 = vector.extract_strided_slice %437 {offsets = [0, 32], sizes = [8, 32], strides = [1, 1]} : vector<8x128xf32> to vector<8x32xf32>
    %445 = arith.negf %444 : vector<8x32xf32>
    %446 = math.exp %445 : vector<8x32xf32>
    %cst_77 = arith.constant 1.000000e+00 : f32
    %447 = vector.broadcast %cst_77 : f32 to vector<8x32xf32>
    %448 = arith.addf %447, %446 : vector<8x32xf32>
    %449 = arith.divf %447, %448 : vector<8x32xf32>
    %450 = vector.extract_strided_slice %437 {offsets = [0, 64], sizes = [8, 32], strides = [1, 1]} : vector<8x128xf32> to vector<8x32xf32>
    %451 = vector.extract_strided_slice %437 {offsets = [0, 96], sizes = [8, 32], strides = [1, 1]} : vector<8x128xf32> to vector<8x32xf32>
    %452 = arith.mulf %443, %451 : vector<8x32xf32>
    %453 = arith.addf %450, %452 : vector<8x32xf32>
    %454 = math.tanh %453 : vector<8x32xf32>
    %cst_78 = arith.constant 1.000000e+00 : f32
    %455 = vector.broadcast %cst_78 : f32 to vector<8x32xf32>
    %456 = arith.subf %455, %449 : vector<8x32xf32>
    %457 = arith.mulf %456, %454 : vector<8x32xf32>
    %458 = arith.mulf %449, %403 : vector<8x32xf32>
    %459 = arith.addf %457, %458 : vector<8x32xf32>
    %cst_79 = arith.constant dense<0.000000e+00> : vector<8xf32>
    %460 = vector.multi_reduction <add>, %459, %cst_79 [1] : vector<8x32xf32> to vector<8xf32>
    %461 = vector.shape_cast %460 : vector<8xf32> to vector<8x1xf32>
    %cst_80 = arith.constant 3.200000e+01 : f32
    %462 = vector.broadcast %cst_80 : f32 to vector<8x1xf32>
    %463 = arith.divf %461, %462 : vector<8x1xf32>
    %464 = vector.broadcast %463 : vector<8x1xf32> to vector<8x32xf32>
    %465 = arith.subf %459, %464 : vector<8x32xf32>
    %466 = arith.mulf %465, %465 : vector<8x32xf32>
    %cst_81 = arith.constant dense<0.000000e+00> : vector<8xf32>
    %467 = vector.multi_reduction <add>, %466, %cst_81 [1] : vector<8x32xf32> to vector<8xf32>
    %468 = vector.shape_cast %467 : vector<8xf32> to vector<8x1xf32>
    %cst_82 = arith.constant 3.200000e+01 : f32
    %469 = vector.broadcast %cst_82 : f32 to vector<8x1xf32>
    %470 = arith.divf %468, %469 : vector<8x1xf32>
    %471 = vector.broadcast %463 : vector<8x1xf32> to vector<8x32xf32>
    %472 = arith.subf %459, %471 : vector<8x32xf32>
    %cst_83 = arith.constant 9.99999974E-6 : f32
    %473 = vector.broadcast %cst_83 : f32 to vector<8x1xf32>
    %474 = arith.addf %470, %473 : vector<8x1xf32>
    %475 = math.rsqrt %474 : vector<8x1xf32>
    %476 = vector.broadcast %475 : vector<8x1xf32> to vector<8x32xf32>
    %477 = arith.mulf %472, %476 : vector<8x32xf32>
    %c0_84 = arith.constant 0 : index
    %c0_85 = arith.constant 0 : index
    %478 = vector.load %arg7[%c0_84, %c0_85] : memref<32x16xf32, #tpu.memory_space<vmem>>, vector<32x16xf32>
    %cst_86 = arith.constant dense<0.000000e+00> : vector<8x16xf32>
    %479 = tpu.matmul %477, %478, %cst_86 {dimension_numbers = #tpu.dot_dimension_numbers<[1], [0], [0], [1], [0, 0, 1, 1], [], []>} : vector<8x32xf32>, vector<32x16xf32>, vector<8x16xf32> -> vector<8x16xf32>
    %c0_87 = arith.constant 0 : index
    %c0_88 = arith.constant 0 : index
    %480 = vector.load %arg8[%c0_87, %c0_88] : memref<1x16xf32, #tpu.memory_space<vmem>>, vector<1x16xf32>
    %481 = vector.broadcast %480 : vector<1x16xf32> to vector<8x16xf32>
    %482 = arith.addf %479, %481 : vector<8x16xf32>
    %cst_89 = arith.constant 0.000000e+00 : f32
    %483 = vector.broadcast %cst_89 : f32 to vector<8x16xf32>
    %484 = arith.maximumf %482, %483 : vector<8x16xf32>
    %c0_90 = arith.constant 0 : index
    %c0_91 = arith.constant 0 : index
    %485 = vector.load %arg9[%c0_90, %c0_91] : memref<1x16xf32, #tpu.memory_space<vmem>>, vector<1x16xf32>
    %486 = vector.broadcast %485 : vector<1x16xf32> to vector<8x16xf32>
    %487 = arith.mulf %484, %486 : vector<8x16xf32>
    %cst_92 = arith.constant dense<0.000000e+00> : vector<8xf32>
    %488 = vector.multi_reduction <add>, %487, %cst_92 [1] : vector<8x16xf32> to vector<8xf32>
    %489 = vector.shape_cast %488 : vector<8xf32> to vector<8x1xf32>
    %c0_93 = arith.constant 0 : index
    %c0_94 = arith.constant 0 : index
    %490 = vector.load %arg10[%c0_93, %c0_94] : memref<1x1xf32, #tpu.memory_space<vmem>>, vector<1x1xf32>
    %491 = vector.broadcast %490 : vector<1x1xf32> to vector<8x1xf32>
    %492 = arith.addf %489, %491 : vector<8x1xf32>
    %c0_95 = arith.constant 0 : index
    %c0_96 = arith.constant 0 : index
    %493 = vector.load %arg11[%c0_95, %c0_96] : memref<8x1xf32, #tpu.memory_space<vmem>>, vector<8x1xf32>
    tpu.vector_store %arg11[%c0_95, %c0_96], %492 {strides = array<i32>} : memref<8x1xf32, #tpu.memory_space<vmem>>, vector<8x1xf32>,
    return
  }
}

</mosaic_0001>

<bundles_post_ra>
// kernel: tpu_custom_call.1
= control target key start
LH: loop header
LB: loop body
LE: loop exit
PB: predicated region body
PF: predicated region fallthrough
CT: control target
= control target key end

     0   :  { %vm78_vm0 = vcmask 1043456   ;;  %vm53_vm1 = vcmask 31744   ;;  %v1408_v6 = vmov 0.0   ;;  %s1409_s29 = smov 64   ;;  %s1410_s13 = smov 96   ;;  %vm140_vm6 = vcmask 261120   ;;  %s1876_s2 = inlined_call_operand.vmem [shape: f32[32,96], index: 2, kind: input, shape index: {}]   ;;  %s1877_s1 = inlined_call_operand.vmem [shape: f32[4,96], index: 1, kind: input, shape index: {}]   ;;  %s1878_s0 = inlined_call_operand.vmem [shape: f32[64,4], index: 0, kind: input, shape index: {}]   ;;  %s1879_s4 = inlined_call_operand.vmem [shape: f32[1,96], index: 4, kind: input, shape index: {}]   ;;  %s1880_s5 = inlined_call_operand.vmem [shape: f32[1,96], index: 5, kind: input, shape index: {}]   ;;  %s1881_s3 = inlined_call_operand.vmem [shape: f32[64,128], index: 3, kind: input, shape index: {}]   ;;  %s1882_s6 = inlined_call_operand.vmem [shape: f32[1,128], index: 6, kind: input, shape index: {}]   ;;  %s1883_s7 = inlined_call_operand.vmem [shape: f32[32,16], index: 7, kind: input, shape index: {}]   ;;  %s1884_s8 = inlined_call_operand.vmem [shape: f32[1,16], index: 8, kind: input, shape index: {}]   ;;  %s1885_s9 = inlined_call_operand.vmem [shape: f32[1,16], index: 9, kind: input, shape index: {}]   ;;  %s1886_s10 = inlined_call_operand.<no memory space> [shape: f32[1,1], index: 10, kind: input, shape index: {}]   ;;  %s1887_s11 = inlined_call_operand.vmem [shape: f32[8,1], index: 11, kind: output, shape index: {}]  }
   0x1   :  { %v1476_v0 = vld [vmem:[%s1876_s2 + $0x18] sm:$0xff]  ;;  %v1481_v1 = vld [vmem:[%s1876_s2 + $0x10] sm:$0xff]  ;;  %v48_v2 = vld [vmem:[%s1877_s1] sm:$0xf]  ;;  %vm211_vm7 = vcmask 523264   ;;  %s1411_s14 = smov 32  }
   0x2   :  { %156 = vmatpush.msra.mxu1 %v1476_v0  ;;  %v40_v3 = vld [vmem:[%s1878_s0] sm:$0xff]  ;;  %287 = vmatpush.msra.mxu3 %v1476_v0  ;;  %v1494_v4 = vld [vmem:[%s1876_s2 + $0x8] sm:$0xff]  ;;  %v1530_v32 = vld [vmem:[%s1881_s3 + $0x38] sm:$0xff] }
   0x3   :  { %1253 = vmatpush.msk.msra.mxu0 %vm78_vm0, %v48_v2  ;;  %v1501_v5 = vld [vmem:[%s1876_s2] sm:$0xff]  ;;  %v1535_v33 = vld [vmem:[%s1881_s3 + $0x30] sm:$0xff]  ;;  %223 = vmatpush.msra.mxu2 %v1530_v32  ;;  %v1542_v34 = vld [vmem:[%s1881_s3 + $0x28] sm:$0xff] }
   0x4   :  { %157 = vmatpush.msra.mxu1 %v1481_v1  ;;  %1254 = vmatmul.msk.f32.vlgmr.msra.gmra.mxu0 %vm53_vm1, %v40_v3  ;;  %v1515_v7 = vld [vmem:[%s1880_s5] ss:$0 sm:$0xff]  ;;  %v1558_v36 = vld [vmem:[%s1881_s3 + $0x18] sm:$0xff]  ;;  %v1566_v37 = vld [vmem:[%s1881_s3 + $0x10] sm:$0xff] }
   0x5   :  { %288 = vmatpush.msra.mxu3 %v1481_v1  ;;  %v1522_v10 = vld [vmem:[%s1879_s4] ss:$0 sm:$0xff]  ;;  %1112 = vmatpush.msrb.mxu0 %v1530_v32  ;;  %v1574_v38 = vld [vmem:[%s1881_s3 + $0x8] sm:$0xff] }
   0x6   :  { %158 = vmatpush.msra.mxu1 %v1494_v4  ;;  %224 = vmatpush.msra.mxu2 %v1535_v33  ;;  %v1550_v35 = vld [vmem:[%s1881_s3 + $0x20] sm:$0xff]  ;;  %v41_v45 = vld [vmem:[%s1878_s0 + $0x8] sm:$0xff] }
   0x7   :  { %289 = vmatpush.msra.mxu3 %v1494_v4  ;;  %1113 = vmatpush.msrb.mxu0 %v1535_v33  ;;  %v1590_v44 = vld [vmem:[%s1881_s3] sm:$0xff] }
   0x8   :  { %159 = vmatpush.msra.mxu1 %v1501_v5  ;;  %225 = vmatpush.msra.mxu2 %v1542_v34 }
   0x9   :  { %160 = vmatmul.f32.vlgmr.msra.gmra.mxu1 %v1408_v6  ;;  %290 = vmatpush.msra.mxu3 %v1501_v5 }
   0xa   :  { %350 = vmatpush.msrb.mxu1 %v1530_v32  ;;  %1114 = vmatpush.msrb.mxu0 %v1542_v34 }
   0xb   :  { %414 = vmatpush.msrb.mxu3 %v1476_v0  ;;  %226 = vmatpush.msra.mxu2 %v1550_v35 }
   0xc   :  { %351 = vmatpush.msrb.mxu1 %v1535_v33  ;;  %1115 = vmatpush.msrb.mxu0 %v1550_v35 }
   0xd   :  { %415 = vmatpush.msrb.mxu3 %v1481_v1  ;;  %227 = vmatpush.msra.mxu2 %v1558_v36 }
   0xe   :  { %352 = vmatpush.msrb.mxu1 %v1542_v34  ;;  %1116 = vmatpush.msrb.mxu0 %v1558_v36 }
   0xf   :  { %416 = vmatpush.msrb.mxu3 %v1494_v4  ;;  %228 = vmatpush.msra.mxu2 %v1566_v37 }
  0x10   :  { %353 = vmatpush.msrb.mxu1 %v1550_v35  ;;  %1117 = vmatpush.msrb.mxu0 %v1566_v37 }
  0x11   :  { %417 = vmatpush.msrb.mxu3 %v1501_v5  ;;  %229 = vmatpush.msra.mxu2 %v1574_v38 }
  0x12   :  { %354 = vmatpush.msrb.mxu1 %v1558_v36  ;;  %1118 = vmatpush.msrb.mxu0 %v1574_v38 }
  0x13   :  { %230 = vmatpush.msra.mxu2 %v1590_v44  ;;  %1255 = vmatmul.msk.f32.gmra.mxu0 %vm53_vm1, %v41_v45 }
  0x14   :  { %355 = vmatpush.msrb.mxu1 %v1566_v37  ;;  %1119 = vmatpush.msrb.mxu0 %v1590_v44 }
  0x15   :  { %477 = vmatpush.msrb.mxu2 %v1530_v32 }
  0x16   :  { %356 = vmatpush.msrb.mxu1 %v1574_v38 }
  0x17   :  { %478 = vmatpush.msrb.mxu2 %v1535_v33 }
  0x18   :  { %357 = vmatpush.msrb.mxu1 %v1590_v44 }
  0x19   :  { %479 = vmatpush.msrb.mxu2 %v1542_v34 }
  0x1a   :  { %604 = vmatpush.msra.mxu1 %v1530_v32 }
  0x1b   :  { %480 = vmatpush.msrb.mxu2 %v1550_v35 }
  0x1c   :  { %605 = vmatpush.msra.mxu1 %v1535_v33 }
  0x1d   :  { %481 = vmatpush.msrb.mxu2 %v1558_v36 }
  0x1e   :  { %606 = vmatpush.msra.mxu1 %v1542_v34 }
  0x1f   :  { %482 = vmatpush.msrb.mxu2 %v1566_v37 }
  0x20   :  { %607 = vmatpush.msra.mxu1 %v1550_v35 }
  0x21   :  { %483 = vmatpush.msrb.mxu2 %v1574_v38 }
  0x22   :  { %608 = vmatpush.msra.mxu1 %v1558_v36 }
  0x23   :  { %484 = vmatpush.msrb.mxu2 %v1590_v44 }
  0x24   :  { %609 = vmatpush.msra.mxu1 %v1566_v37 }
  0x26   :  { %610 = vmatpush.msra.mxu1 %v1574_v38 }
  0x28   :  { %611 = vmatpush.msra.mxu1 %v1590_v44 }
  0x81   :  { %v99_v11 = vpop.f32.mrf.mxu0 }
  0x82   :  { %v100_v12 = vadd.f32 %v1522_v10, %v99_v11 }
  0x86   :  { %v161_v8 = vpop.f32.mrf.mxu1 }
  0x87   :  { %v162_v9 = vadd.f32 %v1515_v7, %v161_v8 }
  0x89   :  { %185 = vrot.lane.b32.xlu0 %v162_v9, %s1409_s29  ;;  %v164_v13 = vadd.f32 %v162_v9, %v100_v12  ;;  %v1637_v9 = vld [vmem:[%s1882_s6] ss:$0 sm:$0xff] }
  0x8b   :  { %v1262_v14 = vmul.f32 -1.442695, %v164_v13 }
  0x8d   :  { %1305 = vpow2.f32 %v1262_v14 }
  0x90   :  { %v102_v50 = vpop.f32.mrf.mxu0 }
  0x91   :  { %v103_v51 = vadd.f32 %v1522_v10, %v102_v50 }
  0x93   :  { %v1306_v15 = vpop.eup %1305 }
  0x94   :  { %v168_v16 = vadd.f32 1.0, %v1306_v15 }
  0x96   :  { %1307 = vrcp.f32 %v168_v16  ;;  %v180_v22 = vand.u32 2147483648, %v168_v16  ;;  %vm174_vm3 = vweird.f32 %v168_v16  ;;  %v178_v23 = vand.u32 2147483647, %v168_v16 }
  0x98   :  { %v181_v25 = vor.u32 1.1754944e-38, %v180_v22  ;;  %vm179_vm5 = vcmp.eq.f32.partialorder %v178_v23, 8.507059e+37 }
  0x9c   :  { %v1308_v17 = vpop.eup %1307 }
  0x9d   :  { %v170_v18 = vmul.f32 %v1308_v17, %v168_v16  ;;  %vm175_vm2 = vweird.f32 %v1308_v17 }
  0x9e   :  { %vm176_vm4 = vmor %vm174_vm3, %vm175_vm2 }
  0x9f   :  { %v171_v19 = vsub.f32 1.0, %v170_v18 }
  0xa1   :  { %v172_v20 = vmul.f32 %v1308_v17, %v171_v19 }
  0xa3   :  { %v173_v21 = vadd.f32 %v1308_v17, %v172_v20 }
  0xa5   :  { %v177_v24 = vsel %vm176_vm4, %v1308_v17, %v173_v21 }
  0xa6   :  { %v182_v27 = vsel %vm179_vm5, %v181_v25, %v177_v24 }
  0xa7   :  { %v195_v39 = vsub.f32 1.0, %v182_v27  ;;  %v201_v41 = vmul.f32 0.0, %v182_v27 }
  0xfb   :  { %v186_v26 = vpop.permute.xlu0 %185 }
  0xfc   :  { %v188_v28 = vmul.f32 %v186_v26, %v182_v27 }
  0xfe   :  { %190 = vrot.lane.b32.xlu0 %v188_v28, %s1409_s29 }
 0x170   :  { %v191_v29 = vpop.permute.xlu0 %190 }
 0x171   :  { %v193_v30 = vadd.f32 %v191_v29, %v100_v12 }
 0x173   :  { %1309 = vtanh.f32 %v193_v30 }
 0x179   :  { %v1310_v31 = vpop.eup %1309 }
 0x17a   :  { %197 = vrot.lane.b32.xlu1 %v1310_v31, %s1410_s13 }
 0x1ec   :  { %v198_v40 = vpop.permute.xlu1 %197 }
 0x1ed   :  { %v200_v42 = vmul.f32 %v198_v40, %v195_v39 }
 0x1ef   :  { %v1583_v43 = vadd.f32 %v201_v41, %v200_v42 }
 0x1f1   :  { %204 = vrot.lane.b32.xlu1 %v1583_v43, %s1410_s13 }
 0x263   :  { %v205_v46 = vpop.permute.xlu1 %204 }
 0x264   :  { %1265 = vmatmul.msk.f32.vlgmr.msra.gmra.mxu3 %vm140_vm6, %v205_v46  ;;  %v207_v47 = vsel %vm140_vm6, %v205_v46, 0.0 }
 0x265   :  { %1263 = vmatmul.msk.f32.vlgmr.msra.gmra.mxu2 %vm211_vm7, %v207_v47  ;;  %541 = vmatpush.msra.mxu3 %v1476_v0 }
 0x266   :  { %731 = vmatpush.msra.mxu2 %v1530_v32 }
 0x267   :  { %542 = vmatpush.msra.mxu3 %v1481_v1 }
 0x268   :  { %732 = vmatpush.msra.mxu2 %v1535_v33 }
 0x269   :  { %543 = vmatpush.msra.mxu3 %v1494_v4 }
 0x26a   :  { %733 = vmatpush.msra.mxu2 %v1542_v34 }
 0x26b   :  { %544 = vmatpush.msra.mxu3 %v1501_v5 }
 0x26c   :  { %734 = vmatpush.msra.mxu2 %v1550_v35 }
 0x26e   :  { %735 = vmatpush.msra.mxu2 %v1558_v36 }
 0x270   :  { %736 = vmatpush.msra.mxu2 %v1566_v37 }
 0x272   :  { %737 = vmatpush.msra.mxu2 %v1574_v38 }
 0x274   :  { %738 = vmatpush.msra.mxu2 %v1590_v44 }
 0x2e7   :  { %v292_v48 = vpop.f32.mrf.mxu3 }
 0x2e8   :  { %v293_v49 = vadd.f32 %v1515_v7, %v292_v48  ;;  %v232_v11 = vpop.f32.mrf.mxu2 }
 0x2e9   :  { %v233_v12 = vadd.f32 %v1637_v9, %v232_v11 }
 0x2ea   :  { %316 = vrot.lane.b32.xlu2 %v293_v49, %s1409_s29  ;;  %v295_v52 = vadd.f32 %v293_v49, %v103_v51 }
 0x2eb   :  { %v1264_v16 = vmul.f32 -1.442695, %v233_v12 }
 0x2ec   :  { %v1266_v53 = vmul.f32 -1.442695, %v295_v52 }
 0x2ee   :  { %1311 = vpow2.f32 %v1266_v53 }
 0x2f4   :  { %v1312_v54 = vpop.eup %1311 }
 0x2f5   :  { %v299_v55 = vadd.f32 1.0, %v1312_v54 }
 0x2f7   :  { %1313 = vrcp.f32 %v299_v55  ;;  %v311_v61 = vand.u32 2147483648, %v299_v55  ;;  %vm305_vm9 = vweird.f32 %v299_v55  ;;  %v309_v62 = vand.u32 2147483647, %v299_v55 }
 0x2f9   :  { %v312_v2 = vor.u32 1.1754944e-38, %v311_v61  ;;  %vm310_vm11 = vcmp.eq.f32.partialorder %v309_v62, 8.507059e+37 }
 0x2fd   :  { %v1314_v56 = vpop.eup %1313 }
 0x2fe   :  { %v301_v57 = vmul.f32 %v1314_v56, %v299_v55  ;;  %vm306_vm8 = vweird.f32 %v1314_v56 }
 0x2ff   :  { %vm307_vm10 = vmor %vm305_vm9, %vm306_vm8 }
 0x300   :  { %v302_v58 = vsub.f32 1.0, %v301_v57 }
 0x302   :  { %v303_v59 = vmul.f32 %v1314_v56, %v302_v58 }
 0x304   :  { %v304_v60 = vadd.f32 %v1314_v56, %v303_v59 }
 0x306   :  { %v308_v63 = vsel %vm307_vm10, %v1314_v56, %v304_v60 }
 0x307   :  { %v313_v6 = vsel %vm310_vm11, %v312_v2, %v308_v63 }
 0x308   :  { %v326_v23 = vsub.f32 1.0, %v313_v6  ;;  %v332_v25 = vmul.f32 %v313_v6, %v1583_v43  ;;  %v42_v43 = vld [vmem:[%s1878_s0 + $0x10] sm:$0xff] }
 0x309   :  { %1256 = vmatmul.msk.f32.gmra.mxu0 %vm53_vm1, %v42_v43 }
 0x344   :  { %v317_v3 = vpop.permute.xlu2 %316 }
 0x345   :  { %v319_v8 = vmul.f32 %v317_v3, %v313_v6 }
 0x347   :  { %321 = vrot.lane.b32.xlu2 %v319_v8, %s1409_s29 }
 0x34f   :  { %255 = vrot.lane.b32.xlu2 %v233_v12, %s1411_s14 }
 0x3a1   :  { %v322_v13 = vpop.permute.xlu2 %321 }
 0x3a2   :  { %v324_v14 = vadd.f32 %v322_v13, %v103_v51  ;;  %v105_v51 = vpop.f32.mrf.mxu0 }
 0x3a3   :  { %v106_v52 = vadd.f32 %v1522_v10, %v105_v51  ;;  %v43_v51 = vld [vmem:[%s1878_s0 + $0x18] sm:$0xff] }
 0x3a4   :  { %1315 = vtanh.f32 %v324_v14  ;;  %1257 = vmatmul.msk.f32.gmra.mxu0 %vm53_vm1, %v43_v51  ;;  %v44_v51 = vld [vmem:[%s1878_s0 + $0x20] sm:$0xff] }
 0x3a5   :  { %1317 = vpow2.f32 %v1264_v16 }
 0x3a9   :  { %v256_v39 = vpop.permute.xlu2 %255 }
 0x3aa   :  { %v1316_v15 = vpop.eup %1315 }
 0x3ab   :  { %328 = vrot.lane.b32.xlu0 %v1316_v15, %s1410_s13  ;;  %v1318_v17 = vpop.eup %1317 }
 0x3ac   :  { %v238_v18 = vadd.f32 1.0, %v1318_v17  ;;  %1258 = vmatmul.msk.f32.gmra.mxu0 %vm53_vm1, %v44_v51 }
 0x3ae   :  { %1319 = vrcp.f32 %v238_v18  ;;  %v250_v29 = vand.u32 2147483648, %v238_v18  ;;  %vm244_vm13 = vweird.f32 %v238_v18  ;;  %v248_v30 = vand.u32 2147483647, %v238_v18 }
 0x3b0   :  { %v251_v40 = vor.u32 1.1754944e-38, %v250_v29  ;;  %vm249_vm15 = vcmp.eq.f32.partialorder %v248_v30, 8.507059e+37 }
 0x3b4   :  { %v1320_v19 = vpop.eup %1319 }
 0x3b5   :  { %v240_v20 = vmul.f32 %v1320_v19, %v238_v18  ;;  %vm245_vm12 = vweird.f32 %v1320_v19 }
 0x3b6   :  { %vm246_vm14 = vmor %vm244_vm13, %vm245_vm12 }
 0x3b7   :  { %v241_v21 = vsub.f32 1.0, %v240_v20 }
 0x3b9   :  { %v242_v22 = vmul.f32 %v1320_v19, %v241_v21 }
 0x3bb   :  { %v243_v27 = vadd.f32 %v1320_v19, %v242_v22 }
 0x3bd   :  { %v247_v31 = vsel %vm246_vm14, %v1320_v19, %v243_v27 }
 0x3be   :  { %v252_v41 = vsel %vm249_vm15, %v251_v40, %v247_v31 }
 0x3bf   :  { %v258_v42 = vmul.f32 %v256_v39, %v252_v41  ;;  %v271_v14 = vmul.f32 0.0, %v252_v41 }
 0x41d   :  { %v329_v24 = vpop.permute.xlu0 %328 }
 0x41e   :  { %v331_v26 = vmul.f32 %v329_v24, %v326_v23 }
 0x420   :  { %v1643_v28 = vadd.f32 %v332_v25, %v331_v26 }
 0x422   :  { %335 = vrot.lane.b32.xlu1 %v1643_v28, %s1410_s13 }
 0x42a   :  { %260 = vrot.lane.b32.xlu1 %v258_v42, %s1409_s29 }
 0x494   :  { %v336_v45 = vpop.permute.xlu1 %335 }
 0x495   :  { %1269 = vmatmul.msk.f32.vlgmr.msrb.gmra.mxu3 %vm140_vm6, %v336_v45 }
 0x496   :  { %668 = vmatpush.msrb.mxu3 %v1476_v0 }
 0x498   :  { %669 = vmatpush.msrb.mxu3 %v1481_v1 }
 0x49a   :  { %670 = vmatpush.msrb.mxu3 %v1494_v4 }
 0x49c   :  { %671 = vmatpush.msrb.mxu3 %v1501_v5  ;;  %v261_v46 = vpop.permute.xlu1 %260 }
 0x49d   :  { %v263_v47 = vadd.f32 %v261_v46, %v233_v12  ;;  %v265_v12 = vsub.f32 1.0, %v252_v41 }
 0x49f   :  { %1321 = vtanh.f32 %v263_v47 }
 0x4a5   :  { %v1322_v50 = vpop.eup %1321 }
 0x518   :  { %v419_v48 = vpop.f32.mrf.mxu3 }
 0x519   :  { %v420_v49 = vadd.f32 %v1515_v7, %v419_v48 }
 0x51b   :  { %443 = vrot.lane.b32.xlu0 %v420_v49, %s1409_s29  ;;  %v422_v53 = vadd.f32 %v420_v49, %v106_v52 }
 0x51d   :  { %v1270_v54 = vmul.f32 -1.442695, %v422_v53 }
 0x51f   :  { %1323 = vpow2.f32 %v1270_v54 }
 0x523   :  { %267 = vrot.lane.b32.xlu0 %v1322_v50, %s1410_s13 }
 0x525   :  { %v1324_v55 = vpop.eup %1323 }
 0x526   :  { %v426_v56 = vadd.f32 1.0, %v1324_v55 }
 0x528   :  { %1325 = vrcp.f32 %v426_v56  ;;  %v438_v62 = vand.u32 2147483648, %v426_v56  ;;  %vm432_vm2 = vweird.f32 %v426_v56  ;;  %v436_v63 = vand.u32 2147483647, %v426_v56 }
 0x52a   :  { %v439_v3 = vor.u32 1.1754944e-38, %v438_v62  ;;  %vm437_vm4 = vcmp.eq.f32.partialorder %v436_v63, 8.507059e+37 }
 0x52e   :  { %v1326_v57 = vpop.eup %1325 }
 0x52f   :  { %v428_v58 = vmul.f32 %v1326_v57, %v426_v56  ;;  %vm433_vm0 = vweird.f32 %v1326_v57 }
 0x530   :  { %vm434_vm3 = vmor %vm432_vm2, %vm433_vm0 }
 0x531   :  { %v429_v59 = vsub.f32 1.0, %v428_v58  ;;  %v108_v58 = vpop.f32.mrf.mxu0 }
 0x533   :  { %v430_v60 = vmul.f32 %v1326_v57, %v429_v59  ;;  %v109_v59 = vadd.f32 %v1522_v10, %v108_v58 }
 0x535   :  { %v431_v61 = vadd.f32 %v1326_v57, %v430_v60 }
 0x537   :  { %v435_v2 = vsel %vm434_vm3, %v1326_v57, %v431_v61 }
 0x538   :  { %v440_v8 = vsel %vm437_vm4, %v439_v3, %v435_v2 }
 0x539   :  { %v453_v24 = vsub.f32 1.0, %v440_v8  ;;  %v459_v26 = vmul.f32 %v440_v8, %v1643_v28 }
 0x58d   :  { %v444_v6 = vpop.permute.xlu0 %443 }
 0x58e   :  { %v446_v11 = vmul.f32 %v444_v6, %v440_v8 }
 0x590   :  { %448 = vrot.lane.b32.xlu2 %v446_v11, %s1409_s29 }
 0x595   :  { %v268_v13 = vpop.permute.xlu0 %267 }
 0x596   :  { %v270_v15 = vmul.f32 %v268_v13, %v265_v12 }
 0x598   :  { %v1662_v16 = vadd.f32 %v271_v14, %v270_v15 }
 0x59a   :  { %v338_v17 = vsel %vm140_vm6, %v336_v45, %v1662_v16 }
 0x59b   :  { %1267 = vmatmul.msk.f32.vlgmr.msrb.gmra.mxu1 %vm211_vm7, %v338_v17 }
 0x59c   :  { %858 = vmatpush.msrb.mxu1 %v1530_v32 }
 0x59e   :  { %859 = vmatpush.msrb.mxu1 %v1535_v33 }
 0x5a0   :  { %860 = vmatpush.msrb.mxu1 %v1542_v34 }
 0x5a2   :  { %861 = vmatpush.msrb.mxu1 %v1550_v35 }
 0x5a4   :  { %862 = vmatpush.msrb.mxu1 %v1558_v36 }
 0x5a6   :  { %863 = vmatpush.msrb.mxu1 %v1566_v37 }
 0x5a8   :  { %864 = vmatpush.msrb.mxu1 %v1574_v38 }
 0x5aa   :  { %865 = vmatpush.msrb.mxu1 %v1590_v44 }
 0x5ea   :  { %v449_v18 = vpop.permute.xlu2 %448 }
 0x5eb   :  { %v451_v19 = vadd.f32 %v449_v18, %v106_v52 }
 0x5ed   :  { %1327 = vtanh.f32 %v451_v19 }
 0x5f3   :  { %v1328_v20 = vpop.eup %1327 }
 0x5f4   :  { %455 = vrot.lane.b32.xlu1 %v1328_v20, %s1410_s13 }
 0x618   :  { %v359_v21 = vpop.f32.mrf.mxu1 }
 0x619   :  { %v360_v22 = vadd.f32 %v1637_v9, %v359_v21 }
 0x61b   :  { %382 = vrot.lane.b32.xlu0 %v360_v22, %s1411_s14  ;;  %v1268_v23 = vmul.f32 -1.442695, %v360_v22 }
 0x61d   :  { %1329 = vpow2.f32 %v1268_v23 }
 0x623   :  { %v1330_v30 = vpop.eup %1329 }
 0x624   :  { %v365_v31 = vadd.f32 1.0, %v1330_v30 }
 0x626   :  { %1331 = vrcp.f32 %v365_v31  ;;  %v377_v45 = vand.u32 2147483648, %v365_v31  ;;  %vm371_vm8 = vweird.f32 %v365_v31  ;;  %v375_v46 = vand.u32 2147483647, %v365_v31 }
 0x628   :  { %v378_v47 = vor.u32 1.1754944e-38, %v377_v45  ;;  %vm376_vm10 = vcmp.eq.f32.partialorder %v375_v46, 8.507059e+37 }
 0x62c   :  { %v1332_v39 = vpop.eup %1331 }
 0x62d   :  { %v367_v40 = vmul.f32 %v1332_v39, %v365_v31  ;;  %vm372_vm5 = vweird.f32 %v1332_v39 }
 0x62e   :  { %vm373_vm9 = vmor %vm371_vm8, %vm372_vm5 }
 0x62f   :  { %v368_v41 = vsub.f32 1.0, %v367_v40 }
 0x631   :  { %v369_v42 = vmul.f32 %v1332_v39, %v368_v41 }
 0x633   :  { %v370_v43 = vadd.f32 %v1332_v39, %v369_v42 }
 0x635   :  { %v374_v28 = vsel %vm373_vm9, %v1332_v39, %v370_v43 }
 0x636   :  { %v379_v49 = vsel %vm376_vm10, %v378_v47, %v374_v28 }
 0x637   :  { %v392_v62 = vsub.f32 1.0, %v379_v49  ;;  %v398_v2 = vmul.f32 %v379_v49, %v1662_v16 }
 0x666   :  { %v456_v25 = vpop.permute.xlu1 %455 }
 0x667   :  { %v458_v27 = vmul.f32 %v456_v25, %v453_v24 }
 0x669   :  { %v1679_v29 = vadd.f32 %v459_v26, %v458_v27 }
 0x66b   :  { %462 = vrot.lane.b32.xlu2 %v1679_v29, %s1410_s13 }
 0x68d   :  { %v383_v48 = vpop.permute.xlu0 %382 }
 0x68e   :  { %v385_v50 = vmul.f32 %v383_v48, %v379_v49 }
 0x690   :  { %387 = vrot.lane.b32.xlu1 %v385_v50, %s1409_s29 }
 0x6c5   :  { %v463_v52 = vpop.permute.xlu2 %462 }
 0x6c6   :  { %1273 = vmatmul.msk.f32.vlgmr.msra.gmra.mxu3 %vm140_vm6, %v463_v52 }
 0x6c7   :  { %795 = vmatpush.msra.mxu3 %v1476_v0 }
 0x6c9   :  { %796 = vmatpush.msra.mxu3 %v1481_v1 }
 0x6cb   :  { %797 = vmatpush.msra.mxu3 %v1494_v4 }
 0x6cd   :  { %798 = vmatpush.msra.mxu3 %v1501_v5 }
 0x702   :  { %v388_v53 = vpop.permute.xlu1 %387 }
 0x703   :  { %v390_v54 = vadd.f32 %v388_v53, %v360_v22 }
 0x705   :  { %1333 = vtanh.f32 %v390_v54 }
 0x70b   :  { %v1334_v55 = vpop.eup %1333 }
 0x70c   :  { %394 = vrot.lane.b32.xlu0 %v1334_v55, %s1410_s13 }
 0x749   :  { %v546_v56 = vpop.f32.mrf.mxu3 }
 0x74a   :  { %v547_v57 = vadd.f32 %v1515_v7, %v546_v56 }
 0x74c   :  { %570 = vrot.lane.b32.xlu2 %v547_v57, %s1409_s29  ;;  %v549_v60 = vadd.f32 %v547_v57, %v109_v59 }
 0x74e   :  { %v1274_v61 = vmul.f32 -1.442695, %v549_v60 }
 0x750   :  { %1335 = vpow2.f32 %v1274_v61 }
 0x756   :  { %v1336_v8 = vpop.eup %1335 }
 0x757   :  { %v553_v12 = vadd.f32 1.0, %v1336_v8 }
 0x759   :  { %1337 = vrcp.f32 %v553_v12  ;;  %vm559_vm12 = vweird.f32 %v553_v12 }
 0x75f   :  { %v1338_v13 = vpop.eup %1337 }
 0x760   :  { %v555_v14 = vmul.f32 %v1338_v13, %v553_v12  ;;  %vm560_vm11 = vweird.f32 %v1338_v13 }
 0x761   :  { %vm561_vm13 = vmor %vm559_vm12, %vm560_vm11 }
 0x762   :  { %v556_v15 = vsub.f32 1.0, %v555_v14 }
 0x77e   :  { %v395_v63 = vpop.permute.xlu0 %394 }
 0x77f   :  { %v397_v3 = vmul.f32 %v395_v63, %v392_v62  ;;  %v111_v63 = vpop.f32.mrf.mxu0 }
 0x781   :  { %v1698_v6 = vadd.f32 %v398_v2, %v397_v3  ;;  %v112_v2 = vadd.f32 %v1522_v10, %v111_v63 }
 0x783   :  { %v465_v11 = vsel %vm140_vm6, %v463_v52, %v1698_v6 }
 0x784   :  { %1271 = vmatmul.msk.f32.vlgmr.msrb.gmra.mxu2 %vm211_vm7, %v465_v11 }
 0x785   :  { %985 = vmatpush.msrb.mxu2 %v1530_v32  ;;  %v557_v32 = vmul.f32 %v1338_v13, %v556_v15 }
 0x787   :  { %986 = vmatpush.msrb.mxu2 %v1535_v33  ;;  %v558_v16 = vadd.f32 %v1338_v13, %v557_v32  ;;  %v565_v33 = vand.u32 2147483648, %v553_v12 }
 0x789   :  { %987 = vmatpush.msrb.mxu2 %v1542_v34  ;;  %v563_v34 = vand.u32 2147483647, %v553_v12  ;;  %v562_v17 = vsel %vm561_vm13, %v1338_v13, %v558_v16 }
 0x78b   :  { %988 = vmatpush.msrb.mxu2 %v1550_v35  ;;  %v566_v35 = vor.u32 1.1754944e-38, %v565_v33  ;;  %vm564_vm14 = vcmp.eq.f32.partialorder %v563_v34, 8.507059e+37 }
 0x78d   :  { %989 = vmatpush.msrb.mxu2 %v1558_v36  ;;  %v567_v18 = vsel %vm564_vm14, %v566_v35, %v562_v17 }
 0x78e   :  { %v580_v28 = vsub.f32 1.0, %v567_v18  ;;  %v586_v48 = vmul.f32 %v567_v18, %v1679_v29 }
 0x78f   :  { %990 = vmatpush.msrb.mxu2 %v1566_v37 }
 0x791   :  { %991 = vmatpush.msrb.mxu2 %v1574_v38 }
 0x793   :  { %992 = vmatpush.msrb.mxu2 %v1590_v44 }
 0x7a6   :  { %v571_v36 = vpop.permute.xlu2 %570 }
 0x7a7   :  { %v573_v37 = vmul.f32 %v571_v36, %v567_v18 }
 0x7a9   :  { %575 = vrot.lane.b32.xlu1 %v573_v37, %s1409_s29 }
 0x807   :  { %v486_v38 = vpop.f32.mrf.mxu2 }
 0x808   :  { %v487_v19 = vadd.f32 %v1637_v9, %v486_v38 }
 0x80a   :  { %509 = vrot.lane.b32.xlu1 %v487_v19, %s1411_s14  ;;  %v1272_v22 = vmul.f32 -1.442695, %v487_v19 }
 0x81b   :  { %v576_v44 = vpop.permute.xlu1 %575 }
 0x81c   :  { %v578_v20 = vadd.f32 %v576_v44, %v109_v59 }
 0x81e   :  { %1339 = vtanh.f32 %v578_v20 }
 0x81f   :  { %1341 = vpow2.f32 %v1272_v22 }
 0x824   :  { %v1340_v21 = vpop.eup %1339 }
 0x825   :  { %582 = vrot.lane.b32.xlu2 %v1340_v21, %s1410_s13  ;;  %v1342_v23 = vpop.eup %1341 }
 0x826   :  { %v492_v24 = vadd.f32 1.0, %v1342_v23 }
 0x828   :  { %1343 = vrcp.f32 %v492_v24  ;;  %v504_v39 = vand.u32 2147483648, %v492_v24  ;;  %vm498_vm0 = vweird.f32 %v492_v24  ;;  %v502_v40 = vand.u32 2147483647, %v492_v24 }
 0x82a   :  { %v505_v42 = vor.u32 1.1754944e-38, %v504_v39  ;;  %vm503_vm3 = vcmp.eq.f32.partialorder %v502_v40, 8.507059e+37 }
 0x82e   :  { %v1344_v25 = vpop.eup %1343 }
 0x82f   :  { %v494_v26 = vmul.f32 %v1344_v25, %v492_v24  ;;  %vm499_vm15 = vweird.f32 %v1344_v25 }
 0x830   :  { %vm500_vm2 = vmor %vm498_vm0, %vm499_vm15 }
 0x831   :  { %v495_v27 = vsub.f32 1.0, %v494_v26 }
 0x833   :  { %v496_v30 = vmul.f32 %v1344_v25, %v495_v27 }
 0x835   :  { %v497_v31 = vadd.f32 %v1344_v25, %v496_v30 }
 0x837   :  { %v501_v41 = vsel %vm500_vm2, %v1344_v25, %v497_v31 }
 0x838   :  { %v506_v43 = vsel %vm503_vm3, %v505_v42, %v501_v41 }
 0x839   :  { %v519_v29 = vsub.f32 1.0, %v506_v43  ;;  %v525_v57 = vmul.f32 %v506_v43, %v1698_v6 }
 0x87c   :  { %v510_v45 = vpop.permute.xlu1 %509 }
 0x87d   :  { %v512_v46 = vmul.f32 %v510_v45, %v506_v43 }
 0x87f   :  { %v583_v47 = vpop.permute.xlu2 %582  ;;  %514 = vrot.lane.b32.xlu2 %v512_v46, %s1409_s29 }
 0x880   :  { %v585_v49 = vmul.f32 %v583_v47, %v580_v28 }
 0x882   :  { %v1717_v50 = vadd.f32 %v586_v48, %v585_v49 }
 0x884   :  { %589 = vrot.lane.b32.xlu0 %v1717_v50, %s1410_s13 }
 0x8d9   :  { %v515_v52 = vpop.permute.xlu2 %514 }
 0x8da   :  { %v517_v53 = vadd.f32 %v515_v52, %v487_v19 }
 0x8dc   :  { %1345 = vtanh.f32 %v517_v53 }
 0x8e2   :  { %v1346_v54 = vpop.eup %1345 }
 0x8e3   :  { %521 = vrot.lane.b32.xlu0 %v1346_v54, %s1410_s13  ;;  %v45_v54 = vld [vmem:[%s1878_s0 + $0x28] sm:$0xff] }
 0x8e4   :  { %1259 = vmatmul.msk.f32.gmra.mxu0 %vm53_vm1, %v45_v54 }
 0x8f6   :  { %v590_v55 = vpop.permute.xlu0 %589 }
 0x8f7   :  { %1277 = vmatmul.msk.f32.vlgmr.msrb.gmra.mxu3 %vm140_vm6, %v590_v55 }
 0x8f8   :  { %922 = vmatpush.msrb.mxu3 %v1476_v0 }
 0x8fa   :  { %923 = vmatpush.msrb.mxu3 %v1481_v1 }
 0x8fc   :  { %924 = vmatpush.msrb.mxu3 %v1494_v4 }
 0x8fe   :  { %925 = vmatpush.msrb.mxu3 %v1501_v5 }
 0x955   :  { %v522_v56 = vpop.permute.xlu0 %521 }
 0x956   :  { %v524_v58 = vmul.f32 %v522_v56, %v519_v29 }
 0x958   :  { %v1732_v59 = vadd.f32 %v525_v57, %v524_v58 }
 0x95a   :  { %v592_v60 = vsel %vm140_vm6, %v590_v55, %v1732_v59 }
 0x95b   :  { %1275 = vmatmul.msk.f32.vlgmr.msra.gmra.mxu1 %vm211_vm7, %v592_v60 }
 0x97a   :  { %v673_v61 = vpop.f32.mrf.mxu3 }
 0x97b   :  { %v674_v62 = vadd.f32 %v1515_v7, %v673_v61 }
 0x97d   :  { %697 = vrot.lane.b32.xlu1 %v674_v62, %s1409_s29  ;;  %v676_v3 = vadd.f32 %v674_v62, %v112_v2 }
 0x97f   :  { %v1278_v8 = vmul.f32 -1.442695, %v676_v3 }
 0x981   :  { %1347 = vpow2.f32 %v1278_v8 }
 0x987   :  { %v1348_v6 = vpop.eup %1347 }
 0x988   :  { %v680_v11 = vadd.f32 1.0, %v1348_v6 }
 0x98a   :  { %1349 = vrcp.f32 %v680_v11  ;;  %v692_v16 = vand.u32 2147483648, %v680_v11  ;;  %vm686_vm5 = vweird.f32 %v680_v11  ;;  %v690_v33 = vand.u32 2147483647, %v680_v11 }
 0x98c   :  { %v693_v17 = vor.u32 1.1754944e-38, %v692_v16  ;;  %vm691_vm9 = vcmp.eq.f32.partialorder %v690_v33, 8.507059e+37 }
 0x990   :  { %v1350_v12 = vpop.eup %1349 }
 0x991   :  { %v682_v13 = vmul.f32 %v1350_v12, %v680_v11  ;;  %vm687_vm4 = vweird.f32 %v1350_v12 }
 0x992   :  { %vm688_vm8 = vmor %vm686_vm5, %vm687_vm4 }
 0x993   :  { %v683_v14 = vsub.f32 1.0, %v682_v13 }
 0x995   :  { %v684_v15 = vmul.f32 %v1350_v12, %v683_v14 }
 0x997   :  { %v685_v32 = vadd.f32 %v1350_v12, %v684_v15 }
 0x999   :  { %v689_v34 = vsel %vm688_vm8, %v1350_v12, %v685_v32 }
 0x99a   :  { %v694_v35 = vsel %vm691_vm9, %v693_v17, %v689_v34 }
 0x99b   :  { %v707_v46 = vsub.f32 1.0, %v694_v35  ;;  %v713_v47 = vmul.f32 %v694_v35, %v1717_v50 }
 0x9d8   :  { %v613_v37 = vpop.f32.mrf.mxu1 }
 0x9d9   :  { %v614_v38 = vadd.f32 %v1637_v9, %v613_v37 }
 0x9db   :  { %v1276_v19 = vmul.f32 -1.442695, %v614_v38 }
 0x9dd   :  { %1351 = vpow2.f32 %v1276_v19 }
 0x9e3   :  { %v1352_v44 = vpop.eup %1351 }
 0x9e4   :  { %v619_v20 = vadd.f32 1.0, %v1352_v44 }
 0x9e6   :  { %1353 = vrcp.f32 %v619_v20  ;;  %v631_v31 = vand.u32 2147483648, %v619_v20  ;;  %vm625_vm11 = vweird.f32 %v619_v20  ;;  %v629_v39 = vand.u32 2147483647, %v619_v20 }
 0x9e8   :  { %v632_v41 = vor.u32 1.1754944e-38, %v631_v31  ;;  %vm630_vm13 = vcmp.eq.f32.partialorder %v629_v39, 8.507059e+37 }
 0x9ec   :  { %v1354_v21 = vpop.eup %1353 }
 0x9ed   :  { %v621_v22 = vmul.f32 %v1354_v21, %v619_v20  ;;  %vm626_vm10 = vweird.f32 %v1354_v21 }
 0x9ee   :  { %vm627_vm12 = vmor %vm625_vm11, %vm626_vm10 }
 0x9ef   :  { %v698_v36 = vpop.permute.xlu1 %697  ;;  %v622_v24 = vsub.f32 1.0, %v621_v22 }
 0x9f0   :  { %v700_v18 = vmul.f32 %v698_v36, %v694_v35 }
 0x9f1   :  { %v623_v26 = vmul.f32 %v1354_v21, %v622_v24 }
 0x9f2   :  { %702 = vrot.lane.b32.xlu2 %v700_v18, %s1409_s29 }
 0x9f3   :  { %v624_v27 = vadd.f32 %v1354_v21, %v623_v26 }
 0x9f5   :  { %v628_v40 = vsel %vm627_vm12, %v1354_v21, %v624_v27 }
 0x9f6   :  { %v633_v43 = vsel %vm630_vm13, %v632_v41, %v628_v40 }
 0x9f7   :  { %v646_v50 = vsub.f32 1.0, %v633_v43  ;;  %v652_v56 = vmul.f32 %v633_v43, %v1732_v59 }
 0x9fa   :  { %636 = vrot.lane.b32.xlu2 %v614_v38, %s1411_s14 }
 0xa4c   :  { %v703_v23 = vpop.permute.xlu2 %702 }
 0xa4d   :  { %v705_v25 = vadd.f32 %v703_v23, %v112_v2 }
 0xa4f   :  { %1355 = vtanh.f32 %v705_v25 }
 0xa54   :  { %v637_v42 = vpop.permute.xlu2 %636 }
 0xa55   :  { %v1356_v30 = vpop.eup %1355  ;;  %v639_v45 = vmul.f32 %v637_v42, %v633_v43 }
 0xa56   :  { %709 = vrot.lane.b32.xlu0 %v1356_v30, %s1410_s13 }
 0xa5e   :  { %641 = vrot.lane.b32.xlu0 %v639_v45, %s1409_s29 }
 0xac8   :  { %v710_v28 = vpop.permute.xlu0 %709 }
 0xac9   :  { %v712_v48 = vmul.f32 %v710_v28, %v707_v46  ;;  %v46_v28 = vld [vmem:[%s1878_s0 + $0x30] sm:$0xff] }
 0xaca   :  { %1260 = vmatmul.msk.f32.gmra.mxu0 %vm53_vm1, %v46_v28 }
 0xacb   :  { %v1746_v49 = vadd.f32 %v713_v47, %v712_v48 }
 0xacd   :  { %716 = vrot.lane.b32.xlu1 %v1746_v49, %s1410_s13 }
 0xad0   :  { %v642_v51 = vpop.permute.xlu0 %641 }
 0xad1   :  { %v644_v52 = vadd.f32 %v642_v51, %v614_v38 }
 0xad3   :  { %1357 = vtanh.f32 %v644_v52 }
 0xad9   :  { %v1358_v53 = vpop.eup %1357 }
 0xada   :  { %648 = vrot.lane.b32.xlu1 %v1358_v53, %s1410_s13 }
 0xb3f   :  { %v717_v55 = vpop.permute.xlu1 %716 }
 0xb40   :  { %1281 = vmatmul.msk.f32.vlgmr.msra.gmra.mxu3 %vm140_vm6, %v717_v55 }
 0xb41   :  { %1049 = vmatpush.msra.mxu3 %v1476_v0 }
 0xb43   :  { %1050 = vmatpush.msra.mxu3 %v1481_v1 }
 0xb45   :  { %1051 = vmatpush.msra.mxu3 %v1494_v4 }
 0xb47   :  { %1052 = vmatpush.msra.mxu3 %v1501_v5  ;;  %v114_v5 = vpop.f32.mrf.mxu0 }
 0xb48   :  { %v115_v59 = vadd.f32 %v1522_v10, %v114_v5 }
 0xb4c   :  { %v649_v29 = vpop.permute.xlu1 %648 }
 0xb4d   :  { %v651_v57 = vmul.f32 %v649_v29, %v646_v50 }
 0xb4f   :  { %v1761_v58 = vadd.f32 %v652_v56, %v651_v57  ;;  %v1796_v56 = vld [vmem:[%s1880_s5] ss:$0 sm:$0xff] }
 0xb51   :  { %v719_v60 = vsel %vm140_vm6, %v717_v55, %v1761_v58 }
 0xb52   :  { %1279 = vmatmul.msk.f32.vlgmr.msra.gmra.mxu2 %vm211_vm7, %v719_v60  ;;  %v1803_v60 = vld [vmem:[%s1879_s4] ss:$0 sm:$0xff] }
 0xbc3   :  { %v800_v61 = vpop.f32.mrf.mxu3 }
 0xbc4   :  { %v801_v0 = vadd.f32 %v1515_v7, %v800_v61 }
 0xbc6   :  { %824 = vrot.lane.b32.xlu2 %v801_v0, %s1409_s29  ;;  %v803_v62 = vadd.f32 %v801_v0, %v115_v59 }
 0xbc8   :  { %v1282_v63 = vmul.f32 -1.442695, %v803_v62 }
 0xbca   :  { %1359 = vpow2.f32 %v1282_v63 }
 0xbd0   :  { %v1360_v2 = vpop.eup %1359 }
 0xbd1   :  { %v807_v3 = vadd.f32 1.0, %v1360_v2 }
 0xbd3   :  { %1361 = vrcp.f32 %v807_v3  ;;  %v819_v13 = vand.u32 2147483648, %v807_v3  ;;  %vm813_vm15 = vweird.f32 %v807_v3  ;;  %v817_v14 = vand.u32 2147483647, %v807_v3 }
 0xbd5   :  { %v740_v1 = vpop.f32.mrf.mxu2  ;;  %v820_v32 = vor.u32 1.1754944e-38, %v819_v13  ;;  %vm818_vm2 = vcmp.eq.f32.partialorder %v817_v14, 8.507059e+37 }
 0xbd6   :  { %v741_v4 = vadd.f32 %v1637_v9, %v740_v1 }
 0xbd8   :  { %763 = vrot.lane.b32.xlu2 %v741_v4, %s1411_s14  ;;  %v1280_v34 = vmul.f32 -1.442695, %v741_v4 }
 0xbd9   :  { %v1362_v8 = vpop.eup %1361 }
 0xbda   :  { %v809_v6 = vmul.f32 %v1362_v8, %v807_v3  ;;  %vm814_vm14 = vweird.f32 %v1362_v8  ;;  %1363 = vpow2.f32 %v1280_v34 }
 0xbdb   :  { %vm815_vm0 = vmor %vm813_vm15, %vm814_vm14 }
 0xbdc   :  { %v810_v11 = vsub.f32 1.0, %v809_v6 }
 0xbde   :  { %v811_v7 = vmul.f32 %v1362_v8, %v810_v11 }
 0xbe0   :  { %v812_v12 = vadd.f32 %v1362_v8, %v811_v7  ;;  %v1364_v17 = vpop.eup %1363 }
 0xbe1   :  { %v746_v35 = vadd.f32 1.0, %v1364_v17 }
 0xbe2   :  { %v816_v15 = vsel %vm815_vm0, %v1362_v8, %v812_v12 }
 0xbe3   :  { %v821_v10 = vsel %vm818_vm2, %v820_v32, %v816_v15  ;;  %1365 = vrcp.f32 %v746_v35  ;;  %v758_v22 = vand.u32 2147483648, %v746_v35  ;;  %vm752_vm4 = vweird.f32 %v746_v35 }
 0xbe4   :  { %v756_v23 = vand.u32 2147483647, %v746_v35  ;;  %v834_v31 = vsub.f32 1.0, %v821_v10  ;;  %v840_v40 = vmul.f32 %v821_v10, %v1746_v49 }
 0xbe5   :  { %v759_v25 = vor.u32 1.1754944e-38, %v758_v22 }
 0xbe6   :  { %vm757_vm8 = vcmp.eq.f32.partialorder %v756_v23, 8.507059e+37 }
 0xbe9   :  { %v1366_v36 = vpop.eup %1365 }
 0xbea   :  { %v748_v18 = vmul.f32 %v1366_v36, %v746_v35  ;;  %vm753_vm3 = vweird.f32 %v1366_v36 }
 0xbeb   :  { %vm754_vm5 = vmor %vm752_vm4, %vm753_vm3 }
 0xbec   :  { %v749_v37 = vsub.f32 1.0, %v748_v18 }
 0xbee   :  { %v750_v44 = vmul.f32 %v1366_v36, %v749_v37 }
 0xbf0   :  { %v751_v20 = vadd.f32 %v1366_v36, %v750_v44 }
 0xbf2   :  { %v755_v24 = vsel %vm754_vm5, %v1366_v36, %v751_v20 }
 0xbf3   :  { %v760_v27 = vsel %vm757_vm8, %v759_v25, %v755_v24 }
 0xbf4   :  { %v773_v48 = vsub.f32 1.0, %v760_v27  ;;  %v779_v51 = vmul.f32 %v760_v27, %v1761_v58  ;;  %v117_v58 = vpop.f32.mrf.mxu0 }
 0xbf5   :  { %v118_v61 = vadd.f32 %v1803_v60, %v117_v58 }
 0xc20   :  { %v825_v16 = vpop.permute.xlu2 %824 }
 0xc21   :  { %v827_v33 = vmul.f32 %v825_v16, %v821_v10 }
 0xc23   :  { %829 = vrot.lane.b32.xlu0 %v827_v33, %s1409_s29 }
 0xc32   :  { %v764_v26 = vpop.permute.xlu2 %763 }
 0xc33   :  { %v766_v30 = vmul.f32 %v764_v26, %v760_v27 }
 0xc95   :  { %v830_v38 = vpop.permute.xlu0 %829 }
 0xc96   :  { %v832_v19 = vadd.f32 %v830_v38, %v115_v59 }
 0xc98   :  { %1367 = vtanh.f32 %v832_v19 }
 0xc9e   :  { %v1368_v21 = vpop.eup %1367 }
 0xc9f   :  { %836 = vrot.lane.b32.xlu1 %v1368_v21, %s1410_s13 }
 0xca7   :  { %768 = vrot.lane.b32.xlu1 %v766_v30, %s1409_s29 }
 0xd11   :  { %v837_v39 = vpop.permute.xlu1 %836 }
 0xd12   :  { %v839_v41 = vmul.f32 %v837_v39, %v834_v31 }
 0xd14   :  { %v1775_v42 = vadd.f32 %v840_v40, %v839_v41  ;;  %v47_v41 = vld [vmem:[%s1878_s0 + $0x38] sm:$0xff] }
 0xd15   :  { %1261 = vmatmul.msk.f32.gmra.mxu0 %vm53_vm1, %v47_v41 }
 0xd16   :  { %843 = vrot.lane.b32.xlu0 %v1775_v42, %s1410_s13 }
 0xd19   :  { %v769_v43 = vpop.permute.xlu1 %768 }
 0xd1a   :  { %v771_v45 = vadd.f32 %v769_v43, %v741_v4 }
 0xd1c   :  { %1369 = vtanh.f32 %v771_v45 }
 0xd22   :  { %v1370_v46 = vpop.eup %1369 }
 0xd23   :  { %775 = vrot.lane.b32.xlu2 %v1370_v46, %s1410_s13 }
 0xd7d   :  { %v776_v47 = vpop.permute.xlu2 %775 }
 0xd7e   :  { %v778_v49 = vmul.f32 %v776_v47, %v773_v48 }
 0xd80   :  { %v1785_v52 = vadd.f32 %v779_v51, %v778_v49 }
 0xd88   :  { %v844_v53 = vpop.permute.xlu0 %843 }
 0xd89   :  { %v846_v54 = vsel %vm140_vm6, %v844_v53, %v1785_v52  ;;  %1285 = vmatmul.msk.f32.vlgmr.msrb.gmra.mxu3 %vm140_vm6, %v844_v53 }
 0xd8a   :  { %1283 = vmatmul.msk.f32.vlgmr.msrb.gmra.mxu1 %vm211_vm7, %v846_v54 }
 0xe07   :  { %v867_v55 = vpop.f32.mrf.mxu1 }
 0xe08   :  { %v868_v50 = vadd.f32 %v1637_v9, %v867_v55 }
 0xe0a   :  { %890 = vrot.lane.b32.xlu2 %v868_v50, %s1411_s14  ;;  %v1284_v4 = vmul.f32 -1.442695, %v868_v50 }
 0xe0c   :  { %v927_v29 = vpop.f32.mrf.mxu3 }
 0xe0d   :  { %v928_v57 = vadd.f32 %v1796_v56, %v927_v29 }
 0xe0f   :  { %951 = vrot.lane.b32.xlu0 %v928_v57, %s1409_s29  ;;  %v930_v0 = vadd.f32 %v928_v57, %v118_v61 }
 0xe11   :  { %v1286_v1 = vmul.f32 -1.442695, %v930_v0 }
 0xe13   :  { %1371 = vpow2.f32 %v1286_v1 }
 0xe14   :  { %1373 = vpow2.f32 %v1284_v4 }
 0xe19   :  { %v1372_v5 = vpop.eup %1371 }
 0xe1a   :  { %v934_v59 = vadd.f32 1.0, %v1372_v5  ;;  %v1374_v62 = vpop.eup %1373 }
 0xe1b   :  { %v873_v63 = vadd.f32 1.0, %v1374_v62 }
 0xe1c   :  { %1375 = vrcp.f32 %v934_v59  ;;  %v946_v14 = vand.u32 2147483648, %v934_v59  ;;  %vm940_vm10 = vweird.f32 %v934_v59  ;;  %v944_v15 = vand.u32 2147483647, %v934_v59 }
 0xe1d   :  { %1377 = vrcp.f32 %v873_v63  ;;  %v885_v36 = vand.u32 2147483648, %v873_v63  ;;  %vm879_vm14 = vweird.f32 %v873_v63  ;;  %v883_v18 = vand.u32 2147483647, %v873_v63 }
 0xe1e   :  { %v947_v16 = vor.u32 1.1754944e-38, %v946_v14  ;;  %vm945_vm12 = vcmp.eq.f32.partialorder %v944_v15, 8.507059e+37 }
 0xe1f   :  { %v886_v19 = vor.u32 1.1754944e-38, %v885_v36  ;;  %vm884_vm0 = vcmp.eq.f32.partialorder %v883_v18, 8.507059e+37 }
 0xe22   :  { %v1376_v2 = vpop.eup %1375 }
 0xe23   :  { %v936_v3 = vmul.f32 %v1376_v2, %v934_v59  ;;  %v1378_v6 = vpop.eup %1377  ;;  %vm941_vm9 = vweird.f32 %v1376_v2 }
 0xe24   :  { %v875_v11 = vmul.f32 %v1378_v6, %v873_v63  ;;  %vm942_vm11 = vmor %vm940_vm10, %vm941_vm9  ;;  %vm880_vm13 = vweird.f32 %v1378_v6 }
 0xe25   :  { %v937_v8 = vsub.f32 1.0, %v936_v3  ;;  %vm881_vm15 = vmor %vm879_vm14, %vm880_vm13 }
 0xe26   :  { %v876_v12 = vsub.f32 1.0, %v875_v11 }
 0xe27   :  { %v938_v7 = vmul.f32 %v1376_v2, %v937_v8 }
 0xe28   :  { %v877_v32 = vmul.f32 %v1378_v6, %v876_v12 }
 0xe29   :  { %v939_v13 = vadd.f32 %v1376_v2, %v938_v7 }
 0xe2a   :  { %v878_v17 = vadd.f32 %v1378_v6, %v877_v32 }
 0xe2b   :  { %v943_v10 = vsel %vm942_vm11, %v1376_v2, %v939_v13 }
 0xe2c   :  { %v948_v34 = vsel %vm945_vm12, %v947_v16, %v943_v10  ;;  %v882_v37 = vsel %vm881_vm15, %v1378_v6, %v878_v17 }
 0xe2d   :  { %v887_v44 = vsel %vm884_vm0, %v886_v19, %v882_v37  ;;  %v961_v27 = vsub.f32 1.0, %v948_v34  ;;  %v967_v31 = vmul.f32 %v948_v34, %v1775_v42 }
 0xe2e   :  { %v900_v45 = vsub.f32 1.0, %v887_v44  ;;  %v906_v28 = vmul.f32 %v887_v44, %v1785_v52 }
 0xe64   :  { %v891_v38 = vpop.permute.xlu2 %890 }
 0xe65   :  { %v893_v20 = vmul.f32 %v891_v38, %v887_v44 }
 0xe81   :  { %v952_v33 = vpop.permute.xlu0 %951 }
 0xe82   :  { %v954_v35 = vmul.f32 %v952_v33, %v948_v34 }
 0xe84   :  { %956 = vrot.lane.b32.xlu1 %v954_v35, %s1409_s29 }
 0xe8c   :  { %895 = vrot.lane.b32.xlu1 %v893_v20, %s1409_s29 }
 0xef6   :  { %v957_v21 = vpop.permute.xlu1 %956 }
 0xef7   :  { %v959_v22 = vadd.f32 %v957_v21, %v118_v61 }
 0xef9   :  { %1379 = vtanh.f32 %v959_v22 }
 0xefe   :  { %v896_v23 = vpop.permute.xlu1 %895 }
 0xeff   :  { %v1380_v24 = vpop.eup %1379  ;;  %v898_v25 = vadd.f32 %v896_v23, %v868_v50  ;;  %v120_v50 = vpop.f32.mrf.mxu0 }
 0xf00   :  { %963 = vrot.lane.b32.xlu0 %v1380_v24, %s1410_s13  ;;  %v121_v57 = vadd.f32 %v1803_v60, %v120_v50 }
 0xf01   :  { %1381 = vtanh.f32 %v898_v25 }
 0xf07   :  { %v1382_v26 = vpop.eup %1381 }
 0xf08   :  { %902 = vrot.lane.b32.xlu0 %v1382_v26, %s1410_s13 }
 0xf72   :  { %v964_v30 = vpop.permute.xlu0 %963 }
 0xf73   :  { %v966_v39 = vmul.f32 %v964_v30, %v961_v27 }
 0xf75   :  { %v1811_v40 = vadd.f32 %v967_v31, %v966_v39 }
 0xf77   :  { %970 = vrot.lane.b32.xlu2 %v1811_v40, %s1410_s13 }
 0xf7a   :  { %v903_v43 = vpop.permute.xlu0 %902 }
 0xf7b   :  { %v905_v46 = vmul.f32 %v903_v43, %v900_v45 }
 0xf7d   :  { %v1820_v47 = vadd.f32 %v906_v28, %v905_v46 }
 0xfd1   :  { %v971_v42 = vpop.permute.xlu2 %970 }
 0xfd2   :  { %v973_v48 = vsel %vm140_vm6, %v971_v42, %v1820_v47  ;;  %1289 = vmatmul.msk.f32.vlgmr.msra.gmra.mxu3 %vm140_vm6, %v971_v42 }
 0xfd3   :  { %1287 = vmatmul.msk.f32.vlgmr.msrb.gmra.mxu2 %vm211_vm7, %v973_v48 }
0x1055   :  { %v1054_v49 = vpop.f32.mrf.mxu3 }
0x1056   :  { %v1055_v51 = vadd.f32 %v1796_v56, %v1054_v49  ;;  %v994_v53 = vpop.f32.mrf.mxu2 }
0x1057   :  { %v995_v54 = vadd.f32 %v1637_v9, %v994_v53 }
0x1058   :  { %1078 = vrot.lane.b32.xlu1 %v1055_v51, %s1409_s29  ;;  %v1057_v58 = vadd.f32 %v1055_v51, %v121_v57 }
0x1059   :  { %1017 = vrot.lane.b32.xlu2 %v995_v54, %s1411_s14  ;;  %v1288_v52 = vmul.f32 -1.442695, %v995_v54 }
0x105a   :  { %v1290_v0 = vmul.f32 -1.442695, %v1057_v58 }
0x105b   :  { %1383 = vpow2.f32 %v1288_v52 }
0x1061   :  { %v1384_v55 = vpop.eup %1383 }
0x1062   :  { %v1000_v29 = vadd.f32 1.0, %v1384_v55 }
0x1064   :  { %1385 = vrcp.f32 %v1000_v29  ;;  %v1012_v62 = vand.u32 2147483648, %v1000_v29  ;;  %vm1006_vm2 = vweird.f32 %v1000_v29  ;;  %v1010_v63 = vand.u32 2147483647, %v1000_v29 }
0x1065   :  { %1387 = vpow2.f32 %v1290_v0 }
0x1066   :  { %v1013_v3 = vor.u32 1.1754944e-38, %v1012_v62  ;;  %vm1011_vm4 = vcmp.eq.f32.partialorder %v1010_v63, 8.507059e+37  ;;  %v1412_v63 = vmov 32.0  }
0x106a   :  { %v1386_v61 = vpop.eup %1385 }
0x106b   :  { %v1002_v1 = vmul.f32 %v1386_v61, %v1000_v29  ;;  %v1388_v4 = vpop.eup %1387  ;;  %vm1007_vm1 = vweird.f32 %v1386_v61 }
0x106c   :  { %v1061_v5 = vadd.f32 1.0, %v1388_v4  ;;  %vm1008_vm3 = vmor %vm1006_vm2, %vm1007_vm1  ;;  %vm1238_vm2 = vcmask 130048  }
0x106d   :  { %v1003_v56 = vsub.f32 1.0, %v1002_v1 }
0x106e   :  { %1389 = vrcp.f32 %v1061_v5  ;;  %v1073_v15 = vand.u32 2147483648, %v1061_v5  ;;  %vm1067_vm8 = vweird.f32 %v1061_v5  ;;  %v1071_v32 = vand.u32 2147483647, %v1061_v5 }
0x106f   :  { %v1004_v9 = vmul.f32 %v1386_v61, %v1003_v56 }
0x1070   :  { %v1074_v16 = vor.u32 1.1754944e-38, %v1073_v15  ;;  %vm1072_vm10 = vcmp.eq.f32.partialorder %v1071_v32, 8.507059e+37 }
0x1071   :  { %v1005_v59 = vadd.f32 %v1386_v61, %v1004_v9 }
0x1073   :  { %v1009_v2 = vsel %vm1008_vm3, %v1386_v61, %v1005_v59 }
0x1074   :  { %v1014_v8 = vsel %vm1011_vm4, %v1013_v3, %v1009_v2  ;;  %v1390_v6 = vpop.eup %1389 }
0x1075   :  { %v1063_v7 = vmul.f32 %v1390_v6, %v1061_v5  ;;  %vm1068_vm5 = vweird.f32 %v1390_v6  ;;  %v1027_v25 = vsub.f32 1.0, %v1014_v8  ;;  %v1033_v27 = vmul.f32 %v1014_v8, %v1820_v47 }
0x1076   :  { %vm1069_vm9 = vmor %vm1067_vm8, %vm1068_vm5 }
0x1077   :  { %v1064_v12 = vsub.f32 1.0, %v1063_v7 }
0x1079   :  { %v1065_v13 = vmul.f32 %v1390_v6, %v1064_v12 }
0x107b   :  { %v1066_v14 = vadd.f32 %v1390_v6, %v1065_v13 }
0x107d   :  { %v1070_v10 = vsel %vm1069_vm9, %v1390_v6, %v1066_v14 }
0x107e   :  { %v1075_v33 = vsel %vm1072_vm10, %v1074_v16, %v1070_v10  ;;  %v1202_v10 = vld [vmem:[%s1883_s7 + $0x18] sm:$0xff]  ;;  %v1201_v16 = vld [vmem:[%s1883_s7 + $0x10] sm:$0xff] }
0x107f   :  { %v1088_v44 = vsub.f32 1.0, %v1075_v33  ;;  %v1094_v21 = vmul.f32 %v1075_v33, %v1811_v40  ;;  %v1407_v40 = vld [vmem:[%s1882_s6] ss:$0 sm:$0xff]  ;;  %1224 = vmatpush.msra.mxu1 %v1202_v10 }
0x1081   :  { %1225 = vmatpush.msra.mxu1 %v1201_v16 }
0x10b3   :  { %v1018_v60 = vpop.permute.xlu2 %1017 }
0x10b4   :  { %v1020_v11 = vmul.f32 %v1018_v60, %v1014_v8 }
0x10b6   :  { %1022 = vrot.lane.b32.xlu1 %v1020_v11, %s1409_s29 }
0x10ca   :  { %v1079_v34 = vpop.permute.xlu1 %1078 }
0x10cb   :  { %v1081_v17 = vmul.f32 %v1079_v34, %v1075_v33  ;;  %v1200_v33 = vld [vmem:[%s1883_s7 + $0x8] sm:$0xff]  ;;  %v1199_v34 = vld [vmem:[%s1883_s7] sm:$0xff] }
0x10cc   :  { %1226 = vmatpush.msra.mxu1 %v1200_v33 }
0x10cd   :  { %1083 = vrot.lane.b32.xlu0 %v1081_v17, %s1409_s29 }
0x10ce   :  { %1227 = vmatpush.msra.mxu1 %v1199_v34 }
0x1128   :  { %v1023_v35 = vpop.permute.xlu1 %1022 }
0x1129   :  { %v1025_v36 = vadd.f32 %v1023_v35, %v995_v54 }
0x112b   :  { %1391 = vtanh.f32 %v1025_v36 }
0x1131   :  { %v1392_v18 = vpop.eup %1391 }
0x1132   :  { %1029 = vrot.lane.b32.xlu0 %v1392_v18, %s1410_s13 }
0x113f   :  { %v1084_v37 = vpop.permute.xlu0 %1083 }
0x1140   :  { %v1086_v38 = vadd.f32 %v1084_v37, %v121_v57 }
0x1142   :  { %1393 = vtanh.f32 %v1086_v38 }
0x1148   :  { %v1394_v19 = vpop.eup %1393 }
0x1149   :  { %1090 = vrot.lane.b32.xlu2 %v1394_v19, %s1410_s13 }
0x11a3   :  { %v1091_v20 = vpop.permute.xlu2 %1090 }
0x11a4   :  { %v1093_v22 = vmul.f32 %v1091_v20, %v1088_v44  ;;  %v1030_v24 = vpop.permute.xlu0 %1029 }
0x11a5   :  { %v1032_v26 = vmul.f32 %v1030_v24, %v1027_v25  ;;  %v16_v24 = vstv %s1886_s10  ;;  %v1302_v25 = vld [vmem:[%s1884_s8] ss:$0 sm:$0xff] }
0x11a6   :  { %v1095_v23 = vadd.f32 %v1094_v21, %v1093_v22  ;;  %17 = vst [vmem:[#allocation2] sm:$0x1] %v16_v24 }
0x11a7   :  { %v1034_v30 = vadd.f32 %v1033_v27, %v1032_v26 }
0x11a8   :  { %1097 = vrot.lane.b32.xlu1 %v1095_v23, %s1410_s13 }
0x121a   :  { %v1098_v31 = vpop.permute.xlu1 %1097 }
0x121b   :  { %v1100_v39 = vsel %vm140_vm6, %v1098_v31, %v1034_v30 }
0x121c   :  { %1291 = vmatmul.msk.f32.vlgmr.msrb.gmra.mxu0 %vm211_vm7, %v1100_v39 }
0x1299   :  { %v1121_v41 = vpop.f32.mrf.mxu0 }
0x129a   :  { %v1122_v43 = vadd.f32 %v1407_v40, %v1121_v41  ;;  %v1304_v40 = vld [vmem:[#allocation2] ss:$0 sm:$0xff] }
0x129c   :  { %1144 = vrot.lane.b32.xlu2 %v1122_v43, %s1411_s14  ;;  %v1292_v45 = vmul.f32 -1.442695, %v1122_v43 }
0x129e   :  { %1395 = vpow2.f32 %v1292_v45 }
0x12a4   :  { %v1396_v46 = vpop.eup %1395 }
0x12a5   :  { %v1127_v28 = vadd.f32 1.0, %v1396_v46 }
0x12a7   :  { %1397 = vrcp.f32 %v1127_v28  ;;  %v1139_v53 = vand.u32 2147483648, %v1127_v28  ;;  %vm1133_vm7 = vweird.f32 %v1127_v28  ;;  %v1137_v54 = vand.u32 2147483647, %v1127_v28 }
0x12a9   :  { %v1140_v55 = vor.u32 1.1754944e-38, %v1139_v53  ;;  %vm1138_vm13 = vcmp.eq.f32.partialorder %v1137_v54, 8.507059e+37 }
0x12ad   :  { %v1398_v47 = vpop.eup %1397 }
0x12ae   :  { %v1129_v42 = vmul.f32 %v1398_v47, %v1127_v28  ;;  %vm1134_vm11 = vweird.f32 %v1398_v47 }
0x12af   :  { %vm1135_vm12 = vmor %vm1133_vm7, %vm1134_vm11 }
0x12b0   :  { %v1130_v48 = vsub.f32 1.0, %v1129_v42 }
0x12b2   :  { %v1131_v49 = vmul.f32 %v1398_v47, %v1130_v48 }
0x12b4   :  { %v1132_v51 = vadd.f32 %v1398_v47, %v1131_v49 }
0x12b6   :  { %v1136_v52 = vsel %vm1135_vm12, %v1398_v47, %v1132_v51 }
0x12b7   :  { %v1141_v29 = vsel %vm1138_vm13, %v1140_v55, %v1136_v52 }
0x12b8   :  { %v1154_v1 = vsub.f32 1.0, %v1141_v29  ;;  %v1160_v4 = vmul.f32 %v1141_v29, %v1034_v30  ;;  %v1303_v30 = vld [vmem:[%s1885_s9] ss:$0 sm:$0xff] }
0x12f6   :  { %v1145_v50 = vpop.permute.xlu2 %1144 }
0x12f7   :  { %v1147_v57 = vmul.f32 %v1145_v50, %v1141_v29 }
0x12f9   :  { %1149 = vrot.lane.b32.xlu0 %v1147_v57, %s1409_s29 }
0x136b   :  { %v1150_v58 = vpop.permute.xlu0 %1149 }
0x136c   :  { %v1152_v61 = vadd.f32 %v1150_v58, %v1122_v43 }
0x136e   :  { %1399 = vtanh.f32 %v1152_v61 }
0x136f   :  { %1401 = vrcp.f32 %v1412_v63 }
0x1374   :  { %v1400_v0 = vpop.eup %1399 }
0x1375   :  { %1156 = vrot.lane.b32.xlu1 %v1400_v0, %s1410_s13  ;;  %v1402_v2 = vpop.eup %1401 }
0x1376   :  { %v1170_v3 = vmul.f32 32.0, %v1402_v2  ;;  %vm1174_vm14 = vweird.f32 %v1402_v2 }
0x1378   :  { %v1171_v60 = vsub.f32 1.0, %v1170_v3 }
0x137a   :  { %v1172_v8 = vmul.f32 %v1402_v2, %v1171_v60 }
0x137c   :  { %v1173_v6 = vadd.f32 %v1402_v2, %v1172_v8 }
0x137e   :  { %v1175_v11 = vsel %vm1174_vm14, %v1402_v2, %v1173_v6 }
0x13e7   :  { %v1157_v56 = vpop.permute.xlu1 %1156 }
0x13e8   :  { %v1159_v9 = vmul.f32 %v1157_v56, %v1154_v1 }
0x13ea   :  { %v1161_v5 = vadd.f32 %v1160_v4, %v1159_v9 }
0x13ec   :  { %1163 = vrot.lane.b32.xlu2 %v1161_v5, %s1410_s13 }
0x1446   :  { %v1164_v59 = vpop.permute.xlu2 %1163 }
0x1447   :  { %v1166_v62 = vsel %vm140_vm6, %v1164_v59, 0.0 }
0x1448   :  { %1167 = vadd.xlane.f32.xlu0 %v1166_v62 }
0x14bb   :  { %v1168_v7 = vpop.xlane.xlu0 %1167 }
0x14bc   :  { %v1176_v12 = vmul.f32 %v1175_v11, %v1168_v7 }
0x14be   :  { %v1177_v13 = vsub.f32 %v1161_v5, %v1176_v12 }
0x14c0   :  { %v1178_v14 = vmul.f32 %v1177_v13, %v1177_v13 }
0x14c2   :  { %1180 = vrot.lane.b32.xlu1 %v1178_v14, %s1410_s13 }
0x1534   :  { %v1181_v15 = vpop.permute.xlu1 %1180 }
0x1535   :  { %v1183_v32 = vsel %vm140_vm6, %v1181_v15, 0.0 }
0x1536   :  { %1184 = vadd.xlane.f32.xlu2 %v1183_v32 }
0x15a9   :  { %v1185_v17 = vpop.xlane.xlu2 %1184 }
0x15aa   :  { %v1186_v35 = vmul.f32 %v1185_v17, %v1175_v11 }
0x15ac   :  { %v1187_v36 = vadd.f32 1e-05, %v1186_v35 }
0x15ae   :  { %1403 = vrsqrt.f32 %v1187_v36  ;;  %vm1194_vm0 = vweird.f32 %v1187_v36 }
0x15b4   :  { %v1404_v18 = vpop.eup %1403 }
0x15b5   :  { %v1189_v37 = vmul.f32 %v1404_v18, %v1187_v36  ;;  %vm1195_vm15 = vweird.f32 %v1404_v18 }
0x15b6   :  { %vm1196_vm1 = vmor %vm1194_vm0, %vm1195_vm15 }
0x15b7   :  { %v1190_v38 = vmul.f32 %v1404_v18, %v1189_v37 }
0x15b9   :  { %v1191_v19 = vmul.f32 0.5, %v1190_v38 }
0x15bb   :  { %v1192_v44 = vsub.f32 1.5, %v1191_v19 }
0x15bd   :  { %v1193_v20 = vmul.f32 %v1404_v18, %v1192_v44 }
0x15bf   :  { %v1197_v21 = vsel %vm1196_vm1, %v1404_v18, %v1193_v20 }
0x15c0   :  { %v1198_v22 = vmul.f32 %v1197_v21, %v1177_v13 }
0x15c2   :  { %1208 = vrot.lane.b32.xlu1 %v1198_v22, %s1410_s13 }
0x1634   :  { %v1209_v23 = vpop.permute.xlu1 %1208 }
0x1635   :  { %1293 = vmatmul.msk.f32.vlgmr.msra.gmra.mxu1 %vm140_vm6, %v1209_v23  ;;  %vm1247_vm6 = vcmask 7168  }
0x16b2   :  { %v1229_v26 = vpop.f32.mrf.mxu1 }
0x16b3   :  { %v1230_v27 = vadd.f32 %v1302_v25, %v1229_v26 }
0x16b5   :  { %v1232_v31 = vmax.f32 %v1230_v27, 0.0 }
0x16b7   :  { %v1237_v39 = vmul.f32 %v1303_v30, %v1232_v31 }
0x16b9   :  { %v1239_v41 = vsel %vm1238_vm2, %v1237_v39, 0.0 }
0x16ba   :  { %1240 = vadd.xlane.f32.xlu1 %v1239_v41 }
0x172d   :  { %v1241_v43 = vpop.xlane.xlu1 %1240 }
0x172e   :  { %v1246_v45 = vadd.f32 %v1304_v40, %v1241_v43 }
0x1730   :  { %1248 = vst.msk [vmem:[%s1887_s11] sm:$0xff] %vm1247_vm6, %v1246_v45 }

</bundles_post_ra>
